<compile_context>
chip_gen: v7x
topology: tpu7x:2x2x1
jax: 0.10.0
libtpu: 0.0.40
codegen_flags: <defaults>
</compile_context>

<pallas_src>
import functools

import jax
import jax.numpy as jnp
import numpy as np
from jax import lax
from jax.experimental import pallas as pl
from jax.experimental.pallas import tpu as pltpu


def lstm_kernel(x_ref, wih_ref, whh_ref, b_ref, wfc_ref, bfc_ref, out_ref,
                seq_buf, gates_scr, *, t_chunk, unroll_t, weights_resident):
    l = pl.program_id(1)
    num_layers = pl.num_programs(1)
    S, BT, HP = seq_buf.shape
    IN_P = x_ref.shape[-1]
    G = 4 * HP
    n_chunks = S // t_chunk

    w_idx = l if weights_resident else 0
    # Weight rows beyond the layer's true input width are exact zeros (wrapper padding),
    # so padded input / hidden lanes contribute nothing.
    wih = wih_ref[w_idx]          # (IN_P, G) bf16, gate order [i, f, o, g]
    whh = whh_ref[w_idx]          # (HP,   G) bf16
    b = b_ref[w_idx]              # (1,    G) f32  (b_ih + b_hh)

    is_first = l == 0
    not_last = l + 1 < num_layers

    def chunk_body(ci, carry):
        t0 = pl.multiple_of(ci * t_chunk, t_chunk)

        # Hoisted input projection for this time chunk: one bf16 MXU matmul with f32
        # accumulation. Layer 0 reads the auto-pipelined x block (IN_P lanes); layers
        # > 0 read the bf16 hidden-state carry (HP lanes).
        @pl.when(is_first)
        def _():
            xs = x_ref[pl.ds(t0, t_chunk)].reshape(t_chunk * BT, IN_P)
            gx = jnp.dot(xs, wih, preferred_element_type=jnp.float32) + b
            gates_scr[...] = gx.reshape(t_chunk, BT, G)

        @pl.when(l > 0)
        def _():
            hs = seq_buf[pl.ds(t0, t_chunk)].reshape(t_chunk * BT, HP)
            gx = jnp.dot(hs, wih[:HP, :], preferred_element_type=jnp.float32) + b
            gates_scr[...] = gx.reshape(t_chunk, BT, G)

        def step(tt, hc):
            h, c = hc                      # h: (BT, HP) bf16, c: (BT, HP) f32
            gates = gates_scr[tt] + jnp.dot(h, whh,
                                            preferred_element_type=jnp.float32)
            # gate layout (wrapper-permuted): [i, f, o | g], each HP lanes (128-aligned)
            sig = jax.nn.sigmoid(gates[:, :3 * HP])
            i_g = sig[:, 0 * HP:1 * HP]
            f_g = sig[:, 1 * HP:2 * HP]
            o_g = sig[:, 2 * HP:3 * HP]
            g_g = jnp.tanh(gates[:, 3 * HP:])
            c_new = f_g * c + i_g * g_g
            h_new = (o_g * jnp.tanh(c_new)).astype(jnp.bfloat16)

            # Feed this layer's hidden state to the next layer (skip on last layer).
            @pl.when(not_last)
            def _():
                seq_buf[t0 + tt] = h_new
            return h_new, c_new

        return lax.fori_loop(0, t_chunk, step, carry, unroll=unroll_t)

    h0 = jnp.zeros((BT, HP), jnp.bfloat16)
    c0 = jnp.zeros((BT, HP), jnp.float32)
    h_last, _ = lax.fori_loop(0, n_chunks, chunk_body, (h0, c0),
                              unroll=(n_chunks <= 2))

    # Final layer: fc(out[:, -1, :])
    @pl.when(l == num_layers - 1)
    def _():
        out_ref[...] = (jnp.dot(h_last, wfc_ref[...],
                                preferred_element_type=jnp.float32)
                        + bfc_ref[...])


def _round_up(x, m):
    return ((x + m - 1) // m) * m


def _pick_time_chunk(S, cap=32):
    # Largest chunk <= cap that divides S (keeps every chunk full so the inner time
    # loop has static bounds and can be unrolled).
    if S <= cap:
        return S
    for c in range(cap, 0, -1):
        if S % c == 0:
            return c
    return 1


def lstm_forward(x, params, hidden_size, num_classes):
    """x: (batch, seq, input_size) float32, batch_first like the PyTorch module."""
    B, S, input_size = x.shape
    H = hidden_size
    L = len(params["wih"])
    f32, bf16 = jnp.float32, jnp.bfloat16

    HP = _round_up(H, 128)                       # lane-aligned hidden width
    G = 4 * HP                                   # packed gate width [i, f, o, g]
    IN_P = max(_round_up(input_size, 128), HP)   # padded layer-0 input width
    C_PAD = _round_up(num_classes, 128)          # lane-dense class dim

    # Batch tiling: sublane-aligned, up to 128 rows for MXU occupancy; split a single
    # large tile in two so the "parallel" bt axis can feed both v7x TensorCores and the
    # input auto-pipeline has something to overlap (trade-off vs. per-step MXU rows).
    BT = min(_round_up(B, 8), 128)
    B_P = _round_up(B, BT)
    n_bt = B_P // BT
    if n_bt == 1 and BT >= 64 and BT % 16 == 0:
        BT //= 2
        B_P = _round_up(B, BT)
        n_bt = B_P // BT

    T_CHUNK = _pick_time_chunk(S)
    unroll_t = T_CHUNK if T_CHUNK <= 16 else 4   # adaptive unroll (avoid code blowup)

    def pack_gate_weights(w, pad_in):
        # w: (4H, in_dim), torch gate order [i, f, g, o]
        # -> (pad_in, G) right-multiply operand, gate order [i, f, o, g], bf16.
        # Padded rows/cols are exact zeros (the kernel relies on this so padded
        # input / hidden lanes contribute nothing).
        in_dim = w.shape[1]
        blocks = [w[k * H:(k + 1) * H] for k in range(4)]
        blocks = [blocks[0], blocks[1], blocks[3], blocks[2]]      # i, f, o, g
        padded = [jnp.pad(blk.T.astype(f32),
                          ((0, pad_in - in_dim), (0, HP - H))) for blk in blocks]
        return jnp.concatenate(padded, axis=1).astype(bf16)

    def pack_gate_bias(bih, bhh):
        bb = (bih + bhh).astype(f32)
        blocks = [bb[k * H:(k + 1) * H] for k in range(4)]
        blocks = [blocks[0], blocks[1], blocks[3], blocks[2]]      # i, f, o, g
        padded = [jnp.pad(blk, (0, HP - H)) for blk in blocks]
        return jnp.concatenate(padded)[None, :]                    # (1, G) f32

    wih_stack = jnp.stack([pack_gate_weights(params["wih"][l], IN_P)
                           for l in range(L)])                     # (L, IN_P, G) bf16
    whh_stack = jnp.stack([pack_gate_weights(params["whh"][l], HP)
                           for l in range(L)])                     # (L, HP,   G) bf16
    b_stack = jnp.stack([pack_gate_bias(params["bih"][l], params["bhh"][l])
                         for l in range(L)])                       # (L, 1,    G) f32

    wfc = jnp.pad(params["wfc"].T.astype(f32),
                  ((0, HP - H), (0, C_PAD - num_classes))).astype(bf16)  # (HP, C_PAD)
    bfc = jnp.pad(params["bfc"].astype(f32), (0, C_PAD - num_classes))[None, :]

    # time-major, batch/feature padded, split into batch tiles; bf16 halves staging
    # HBM traffic and matches the MXU operand dtype.
    x_tm = jnp.transpose(x.astype(f32), (1, 0, 2))                 # (S, B, in)
    x_tm = jnp.pad(x_tm, ((0, 0), (0, B_P - B), (0, IN_P - input_size)))
    x_tiles = (x_tm.reshape(S, n_bt, BT, IN_P)
               .transpose(1, 0, 2, 3).astype(bf16))                # (n_bt, S, BT, IN_P)

    # ---- VMEM budget / weight-residency decision --------------------------------
    bfb, f4 = 2, 4
    x_buf_bytes = 2 * S * BT * IN_P * bfb          # double-buffered input block
    seq_bytes = S * BT * HP * bfb                  # layer-to-layer hidden carry
    gates_bytes = T_CHUNK * BT * G * f4            # per-chunk projected gates
    fc_bytes = 2 * (HP * C_PAD * bfb + C_PAD * f4) + 2 * BT * C_PAD * f4
    w_layer_bytes = (IN_P + HP) * G * bfb + G * f4
    base_bytes = x_buf_bytes + seq_bytes + gates_bytes + fc_bytes

    try:
        vmem_cap = int(getattr(pltpu.get_tpu_info(), "vmem_capacity_bytes", 64 << 20))
    except Exception:
        vmem_cap = 64 << 20
    budget = vmem_cap - (8 << 20)                  # leave headroom (v7x: 64 MiB total)

    # Keep the whole weight stack resident across the grid when it fits (no HBM
    # re-streaming for every batch tile); otherwise stream one layer at a time.
    resident_bytes = base_bytes + 2 * L * w_layer_bytes
    streamed_bytes = base_bytes + 2 * w_layer_bytes
    weights_resident = resident_bytes <= budget
    vmem_needed = resident_bytes if weights_resident else streamed_bytes
    vmem_limit = int(max(min(budget, vmem_needed + (4 << 20)), 16 << 20))

    if weights_resident:
        wih_spec = pl.BlockSpec((L, IN_P, G), lambda bt, l: (0, 0, 0))
        whh_spec = pl.BlockSpec((L, HP, G), lambda bt, l: (0, 0, 0))
        b_spec = pl.BlockSpec((L, 1, G), lambda bt, l: (0, 0, 0))
    else:
        wih_spec = pl.BlockSpec((1, IN_P, G), lambda bt, l: (l, 0, 0))
        whh_spec = pl.BlockSpec((1, HP, G), lambda bt, l: (l, 0, 0))
        b_spec = pl.BlockSpec((1, 1, G), lambda bt, l: (l, 0, 0))

    kernel = functools.partial(lstm_kernel, t_chunk=T_CHUNK, unroll_t=unroll_t,
                               weights_resident=weights_resident)

    out = pl.pallas_call(
        kernel,
        out_shape=jax.ShapeDtypeStruct((B_P, C_PAD), f32),
        grid_spec=pltpu.PrefetchScalarGridSpec(
            num_scalar_prefetch=0,
            grid=(n_bt, L),
            in_specs=[
                # x block indexed by bt only: auto-pipelined, so the fetch of tile
                # bt+1 overlaps tile bt's last-layer recurrence; revisited (no
                # refetch) across the layer axis.
                pl.BlockSpec((None, S, BT, IN_P), lambda bt, l: (bt, 0, 0, 0)),
                wih_spec, whh_spec, b_spec,
                pl.BlockSpec((HP, C_PAD), lambda bt, l: (0, 0)),
                pl.BlockSpec((1, C_PAD), lambda bt, l: (0, 0)),
            ],
            out_specs=pl.BlockSpec((BT, C_PAD), lambda bt, l: (bt, 0)),
            scratch_shapes=[
                pltpu.VMEM((S, BT, HP), bf16),          # layer-to-layer hidden carry
                pltpu.VMEM((T_CHUNK, BT, G), f32),      # per-chunk projected gates
            ],
        ),
        compiler_params=pltpu.CompilerParams(
            dimension_semantics=("parallel", "arbitrary"),
            vmem_limit_bytes=vmem_limit),
    )(x_tiles, wih_stack, whh_stack, b_stack, wfc, bfc)
    return out[:B, :num_classes]


def lstm_ref(x, params, hidden_size, num_classes):
    """Pure-JAX f32 reference matching torch.nn.LSTM(batch_first) + Linear."""
    B, S, _ = x.shape
    H = hidden_size
    L = len(params["wih"])
    layer_in = x
    for l in range(L):
        Wih, Whh = params["wih"][l], params["whh"][l]
        bih, bhh = params["bih"][l], params["bhh"][l]
        h = jnp.zeros((B, H), jnp.float32)
        c = jnp.zeros((B, H), jnp.float32)
        outs = []
        for t in range(S):
            gates = layer_in[:, t, :] @ Wih.T + bih + h @ Whh.T + bhh
            i_g = jax.nn.sigmoid(gates[:, 0 * H:1 * H])
            f_g = jax.nn.sigmoid(gates[:, 1 * H:2 * H])
            g_g = jnp.tanh(gates[:, 2 * H:3 * H])
            o_g = jax.nn.sigmoid(gates[:, 3 * H:4 * H])
            c = f_g * c + i_g * g_g
            h = o_g * jnp.tanh(c)
            outs.append(h)
        layer_in = jnp.stack(outs, axis=1)
    return layer_in[:, -1, :] @ params["wfc"].T + params["bfc"]


def init_params(key, input_size, hidden_size, num_layers, num_classes):
    H = hidden_size
    k = 1.0 / np.sqrt(H)
    params = {"wih": [], "whh": [], "bih": [], "bhh": []}
    for l in range(num_layers):
        in_dim = input_size if l == 0 else H
        key, k1, k2, k3, k4 = jax.random.split(key, 5)
        params["wih"].append(jax.random.uniform(k1, (4 * H, in_dim), jnp.float32, -k, k))
        params["whh"].append(jax.random.uniform(k2, (4 * H, H), jnp.float32, -k, k))
        params["bih"].append(jax.random.uniform(k3, (4 * H,), jnp.float32, -k, k))
        params["bhh"].append(jax.random.uniform(k4, (4 * H,), jnp.float32, -k, k))
    key, k5, k6 = jax.random.split(key, 3)
    params["wfc"] = jax.random.uniform(k5, (num_classes, H), jnp.float32, -k, k)
    params["bfc"] = jax.random.uniform(k6, (num_classes,), jnp.float32, -k, k)
    return params


if __name__ == "__main__":
    batch, seq = 2, 8
    input_size, hidden_size, num_layers, num_classes = 16, 32, 2, 5

    key = jax.random.PRNGKey(0)
    key, kx = jax.random.split(key)
    x = jax.random.normal(kx, (batch, seq, input_size), jnp.float32)
    params = init_params(key, input_size, hidden_size, num_layers, num_classes)

    out = jax.block_until_ready(lstm_forward(x, params, hidden_size, num_classes))
    ref = jax.block_until_ready(lstm_ref(x, params, hidden_size, num_classes))

    # bf16 MXU operands (per perf review) vs. the pure-f32 reference: allow bf16-level
    # rounding accumulated over S timesteps x L layers.
    np.testing.assert_allclose(np.asarray(out), np.asarray(ref), rtol=5e-2, atol=5e-2)

    assert out.shape == (batch, num_classes)
    print("KERNEL_OK")
</pallas_src>

<mosaic_0001>
module attributes {stable_mosaic.version = 11 : i64} {
  func.func @lstm_kernel(%arg0: i32, %arg1: i32, %arg2: memref<1x8x8x128xbf16, #tpu.memory_space<vmem>>, %arg3: memref<2x128x512xbf16, #tpu.memory_space<vmem>>, %arg4: memref<2x128x512xbf16, #tpu.memory_space<vmem>>, %arg5: memref<2x1x512xf32, #tpu.memory_space<vmem>>, %arg6: memref<128x128xbf16, #tpu.memory_space<vmem>>, %arg7: memref<1x128xf32, #tpu.memory_space<vmem>>, %arg8: memref<8x128xf32, #tpu.memory_space<vmem>>, %arg9: memref<8x8x128xbf16, #tpu.memory_space<vmem>>, %arg10: memref<8x8x512xf32, #tpu.memory_space<vmem>>) attributes {dimension_semantics = [#tpu.dimension_semantics<parallel>, #tpu.dimension_semantics<arbitrary>], iteration_bounds = array<i64: 1, 2>, scalar_prefetch = 0 : i64, scratch_operands = 2 : i64, tpu.core_type = #tpu.core_type<tc>, window_params = [{transform_indices = @transform_0, window_bounds = array<i64: 1, 8, 8, 128>}, {pipeline_mode = #tpu.pipeline_mode<synchronous>, transform_indices = @transform_1, window_bounds = array<i64: 2, 128, 512>}, {pipeline_mode = #tpu.pipeline_mode<synchronous>, transform_indices = @transform_2, window_bounds = array<i64: 2, 128, 512>}, {pipeline_mode = #tpu.pipeline_mode<synchronous>, transform_indices = @transform_3, window_bounds = array<i64: 2, 1, 512>}, {pipeline_mode = #tpu.pipeline_mode<synchronous>, transform_indices = @transform_4, window_bounds = array<i64: 128, 128>}, {pipeline_mode = #tpu.pipeline_mode<synchronous>, transform_indices = @transform_5, window_bounds = array<i64: 1, 128>}, {transform_indices = @transform_6, window_bounds = array<i64: 8, 128>}]} {
    %0 = arith.index_cast %arg1 : i32 to index
    %c0 = arith.constant 0 : index
    %c0_0 = arith.constant 0 : index
    %1 = vector.load %arg3[%0, %c0, %c0_0] : memref<2x128x512xbf16, #tpu.memory_space<vmem>>, vector<1x128x512xbf16>
    %2 = vector.shape_cast %1 : vector<1x128x512xbf16> to vector<128x512xbf16>
    %3 = arith.index_cast %arg1 : i32 to index
    %c0_1 = arith.constant 0 : index
    %c0_2 = arith.constant 0 : index
    %4 = vector.load %arg4[%3, %c0_1, %c0_2] : memref<2x128x512xbf16, #tpu.memory_space<vmem>>, vector<1x128x512xbf16>
    %5 = vector.shape_cast %4 : vector<1x128x512xbf16> to vector<128x512xbf16>
    %6 = arith.index_cast %arg1 : i32 to index
    %c0_3 = arith.constant 0 : index
    %c0_4 = arith.constant 0 : index
    %7 = vector.load %arg5[%6, %c0_3, %c0_4] : memref<2x1x512xf32, #tpu.memory_space<vmem>>, vector<1x1x512xf32>
    %8 = vector.shape_cast %7 : vector<1x1x512xf32> to vector<1x512xf32>
    %c0_i32 = arith.constant 0 : i32
    %9 = arith.cmpi eq, %arg1, %c0_i32 : i32
    %c1_i32 = arith.constant 1 : i32
    %10 = arith.addi %arg1, %c1_i32 : i32
    %c2_i32 = arith.constant 2 : i32
    %11 = arith.cmpi slt, %10, %c2_i32 : i32
    %cst = arith.constant 0.000000e+00 : bf16
    %12 = vector.broadcast %cst : bf16 to vector<8x128xbf16>
    %cst_5 = arith.constant 0.000000e+00 : f32
    %13 = vector.broadcast %cst_5 : f32 to vector<8x128xf32>
    %c0_i32_6 = arith.constant 0 : i32
    %c8_i32 = arith.constant 8 : i32
    %14 = arith.muli %c0_i32_6, %c8_i32 : i32
    %15 = tpu.assume_multiple %14, 8 : i32
    %16 = arith.extui %9 : i1 to i32
    %c0_i32_7 = arith.constant 0 : i32
    %17 = arith.cmpi ne, %16, %c0_i32_7 : i32
    scf.if %17 {
      %c0_57 = arith.constant 0 : index
      %216 = arith.index_cast %15 : i32 to index
      %c0_58 = arith.constant 0 : index
      %c0_59 = arith.constant 0 : index
      %217 = vector.load %arg2[%c0_57, %216, %c0_58, %c0_59] : memref<1x8x8x128xbf16, #tpu.memory_space<vmem>>, vector<1x8x8x128xbf16>
      %218 = vector.shape_cast %217 : vector<1x8x8x128xbf16> to vector<8x8x128xbf16>
      %219 = vector.shape_cast %218 : vector<8x8x128xbf16> to vector<64x128xbf16>
      %cst_60 = arith.constant dense<0.000000e+00> : vector<64x512xf32>
      %220 = tpu.matmul %219, %2, %cst_60 {dimension_numbers = #tpu.dot_dimension_numbers<[1], [0], [0], [1], [0, 0, 1, 1], [], []>} : vector<64x128xbf16>, vector<128x512xbf16>, vector<64x512xf32> -> vector<64x512xf32>
      %221 = vector.broadcast %8 : vector<1x512xf32> to vector<64x512xf32>
      %222 = arith.addf %220, %221 : vector<64x512xf32>
      %223 = vector.shape_cast %222 : vector<64x512xf32> to vector<8x8x512xf32>
      %c0_61 = arith.constant 0 : index
      %c0_62 = arith.constant 0 : index
      %c0_63 = arith.constant 0 : index
      %224 = vector.load %arg10[%c0_61, %c0_62, %c0_63] : memref<8x8x512xf32, #tpu.memory_space<vmem>>, vector<8x8x512xf32>
      tpu.vector_store %arg10[%c0_61, %c0_62, %c0_63], %223 {strides = array<i32>} : memref<8x8x512xf32, #tpu.memory_space<vmem>>, vector<8x8x512xf32>,
    } else {
    }
    %c0_i32_8 = arith.constant 0 : i32
    %18 = arith.cmpi sgt, %arg1, %c0_i32_8 : i32
    %19 = arith.extui %18 : i1 to i32
    %c0_i32_9 = arith.constant 0 : i32
    %20 = arith.cmpi ne, %19, %c0_i32_9 : i32
    scf.if %20 {
      %216 = arith.index_cast %15 : i32 to index
      %c0_57 = arith.constant 0 : index
      %c0_58 = arith.constant 0 : index
      %217 = vector.load %arg9[%216, %c0_57, %c0_58] : memref<8x8x128xbf16, #tpu.memory_space<vmem>>, vector<8x8x128xbf16>
      %218 = vector.shape_cast %217 : vector<8x8x128xbf16> to vector<64x128xbf16>
      %cst_59 = arith.constant dense<0.000000e+00> : vector<64x512xf32>
      %219 = tpu.matmul %218, %2, %cst_59 {dimension_numbers = #tpu.dot_dimension_numbers<[1], [0], [0], [1], [0, 0, 1, 1], [], []>} : vector<64x128xbf16>, vector<128x512xbf16>, vector<64x512xf32> -> vector<64x512xf32>
      %220 = vector.broadcast %8 : vector<1x512xf32> to vector<64x512xf32>
      %221 = arith.addf %219, %220 : vector<64x512xf32>
      %222 = vector.shape_cast %221 : vector<64x512xf32> to vector<8x8x512xf32>
      %c0_60 = arith.constant 0 : index
      %c0_61 = arith.constant 0 : index
      %c0_62 = arith.constant 0 : index
      %223 = vector.load %arg10[%c0_60, %c0_61, %c0_62] : memref<8x8x512xf32, #tpu.memory_space<vmem>>, vector<8x8x512xf32>
      tpu.vector_store %arg10[%c0_60, %c0_61, %c0_62], %222 {strides = array<i32>} : memref<8x8x512xf32, #tpu.memory_space<vmem>>, vector<8x8x512xf32>,
    } else {
    }
    %c0_i32_10 = arith.constant 0 : i32
    %21 = arith.index_cast %c0_i32_10 : i32 to index
    %c0_11 = arith.constant 0 : index
    %c0_12 = arith.constant 0 : index
    %22 = vector.load %arg10[%21, %c0_11, %c0_12] : memref<8x8x512xf32, #tpu.memory_space<vmem>>, vector<1x8x512xf32>
    %23 = vector.shape_cast %22 : vector<1x8x512xf32> to vector<8x512xf32>
    %cst_13 = arith.constant dense<0.000000e+00> : vector<8x512xf32>
    %24 = tpu.matmul %12, %5, %cst_13 {dimension_numbers = #tpu.dot_dimension_numbers<[1], [0], [0], [1], [0, 0, 1, 1], [], []>} : vector<8x128xbf16>, vector<128x512xbf16>, vector<8x512xf32> -> vector<8x512xf32>
    %25 = arith.addf %23, %24 : vector<8x512xf32>
    %26 = vector.extract_strided_slice %25 {offsets = [0, 0], sizes = [8, 384], strides = [1, 1]} : vector<8x512xf32> to vector<8x384xf32>
    %27 = arith.negf %26 : vector<8x384xf32>
    %28 = math.exp %27 : vector<8x384xf32>
    %cst_14 = arith.constant 1.000000e+00 : f32
    %29 = vector.broadcast %cst_14 : f32 to vector<8x384xf32>
    %30 = arith.addf %29, %28 : vector<8x384xf32>
    %31 = arith.divf %29, %30 : vector<8x384xf32>
    %32 = vector.extract_strided_slice %31 {offsets = [0, 0], sizes = [8, 128], strides = [1, 1]} : vector<8x384xf32> to vector<8x128xf32>
    %33 = vector.extract_strided_slice %31 {offsets = [0, 128], sizes = [8, 128], strides = [1, 1]} : vector<8x384xf32> to vector<8x128xf32>
    %34 = vector.extract_strided_slice %31 {offsets = [0, 256], sizes = [8, 128], strides = [1, 1]} : vector<8x384xf32> to vector<8x128xf32>
    %35 = vector.extract_strided_slice %25 {offsets = [0, 384], sizes = [8, 128], strides = [1, 1]} : vector<8x512xf32> to vector<8x128xf32>
    %36 = math.tanh %35 : vector<8x128xf32>
    %37 = arith.mulf %33, %13 : vector<8x128xf32>
    %38 = arith.mulf %32, %36 : vector<8x128xf32>
    %39 = arith.addf %37, %38 : vector<8x128xf32>
    %40 = math.tanh %39 : vector<8x128xf32>
    %41 = arith.mulf %34, %40 : vector<8x128xf32>
    %42 = arith.truncf %41 : vector<8x128xf32> to vector<8x128xbf16>
    %43 = arith.extui %11 : i1 to i32
    %c0_i32_15 = arith.constant 0 : i32
    %44 = arith.cmpi ne, %43, %c0_i32_15 : i32
    scf.if %44 {
      %216 = arith.addi %15, %c0_i32_10 : i32
      %217 = arith.index_cast %216 : i32 to index
      %c0_57 = arith.constant 0 : index
      %c0_58 = arith.constant 0 : index
      %218 = vector.load %arg9[%217, %c0_57, %c0_58] : memref<8x8x128xbf16, #tpu.memory_space<vmem>>, vector<1x8x128xbf16>
      %219 = vector.shape_cast %218 : vector<1x8x128xbf16> to vector<8x128xbf16>
      %220 = vector.shape_cast %42 : vector<8x128xbf16> to vector<1x8x128xbf16>
      tpu.vector_store %arg9[%217, %c0_57, %c0_58], %220 {strides = array<i32>} : memref<8x8x128xbf16, #tpu.memory_space<vmem>>, vector<1x8x128xbf16>,
    } else {
    }
    %c1_i32_16 = arith.constant 1 : i32
    %45 = arith.index_cast %c1_i32_16 : i32 to index
    %c0_17 = arith.constant 0 : index
    %c0_18 = arith.constant 0 : index
    %46 = vector.load %arg10[%45, %c0_17, %c0_18] : memref<8x8x512xf32, #tpu.memory_space<vmem>>, vector<1x8x512xf32>
    %47 = vector.shape_cast %46 : vector<1x8x512xf32> to vector<8x512xf32>
    %cst_19 = arith.constant dense<0.000000e+00> : vector<8x512xf32>
    %48 = tpu.matmul %42, %5, %cst_19 {dimension_numbers = #tpu.dot_dimension_numbers<[1], [0], [0], [1], [0, 0, 1, 1], [], []>} : vector<8x128xbf16>, vector<128x512xbf16>, vector<8x512xf32> -> vector<8x512xf32>
    %49 = arith.addf %47, %48 : vector<8x512xf32>
    %50 = vector.extract_strided_slice %49 {offsets = [0, 0], sizes = [8, 384], strides = [1, 1]} : vector<8x512xf32> to vector<8x384xf32>
    %51 = arith.negf %50 : vector<8x384xf32>
    %52 = math.exp %51 : vector<8x384xf32>
    %cst_20 = arith.constant 1.000000e+00 : f32
    %53 = vector.broadcast %cst_20 : f32 to vector<8x384xf32>
    %54 = arith.addf %53, %52 : vector<8x384xf32>
    %55 = arith.divf %53, %54 : vector<8x384xf32>
    %56 = vector.extract_strided_slice %55 {offsets = [0, 0], sizes = [8, 128], strides = [1, 1]} : vector<8x384xf32> to vector<8x128xf32>
    %57 = vector.extract_strided_slice %55 {offsets = [0, 128], sizes = [8, 128], strides = [1, 1]} : vector<8x384xf32> to vector<8x128xf32>
    %58 = vector.extract_strided_slice %55 {offsets = [0, 256], sizes = [8, 128], strides = [1, 1]} : vector<8x384xf32> to vector<8x128xf32>
    %59 = vector.extract_strided_slice %49 {offsets = [0, 384], sizes = [8, 128], strides = [1, 1]} : vector<8x512xf32> to vector<8x128xf32>
    %60 = math.tanh %59 : vector<8x128xf32>
    %61 = arith.mulf %57, %39 : vector<8x128xf32>
    %62 = arith.mulf %56, %60 : vector<8x128xf32>
    %63 = arith.addf %61, %62 : vector<8x128xf32>
    %64 = math.tanh %63 : vector<8x128xf32>
    %65 = arith.mulf %58, %64 : vector<8x128xf32>
    %66 = arith.truncf %65 : vector<8x128xf32> to vector<8x128xbf16>
    %67 = arith.extui %11 : i1 to i32
    %c0_i32_21 = arith.constant 0 : i32
    %68 = arith.cmpi ne, %67, %c0_i32_21 : i32
    scf.if %68 {
      %216 = arith.addi %15, %c1_i32_16 : i32
      %217 = arith.index_cast %216 : i32 to index
      %c0_57 = arith.constant 0 : index
      %c0_58 = arith.constant 0 : index
      %218 = vector.load %arg9[%217, %c0_57, %c0_58] : memref<8x8x128xbf16, #tpu.memory_space<vmem>>, vector<1x8x128xbf16>
      %219 = vector.shape_cast %218 : vector<1x8x128xbf16> to vector<8x128xbf16>
      %220 = vector.shape_cast %66 : vector<8x128xbf16> to vector<1x8x128xbf16>
      tpu.vector_store %arg9[%217, %c0_57, %c0_58], %220 {strides = array<i32>} : memref<8x8x128xbf16, #tpu.memory_space<vmem>>, vector<1x8x128xbf16>,
    } else {
    }
    %c2_i32_22 = arith.constant 2 : i32
    %69 = arith.index_cast %c2_i32_22 : i32 to index
    %c0_23 = arith.constant 0 : index
    %c0_24 = arith.constant 0 : index
    %70 = vector.load %arg10[%69, %c0_23, %c0_24] : memref<8x8x512xf32, #tpu.memory_space<vmem>>, vector<1x8x512xf32>
    %71 = vector.shape_cast %70 : vector<1x8x512xf32> to vector<8x512xf32>
    %cst_25 = arith.constant dense<0.000000e+00> : vector<8x512xf32>
    %72 = tpu.matmul %66, %5, %cst_25 {dimension_numbers = #tpu.dot_dimension_numbers<[1], [0], [0], [1], [0, 0, 1, 1], [], []>} : vector<8x128xbf16>, vector<128x512xbf16>, vector<8x512xf32> -> vector<8x512xf32>
    %73 = arith.addf %71, %72 : vector<8x512xf32>
    %74 = vector.extract_strided_slice %73 {offsets = [0, 0], sizes = [8, 384], strides = [1, 1]} : vector<8x512xf32> to vector<8x384xf32>
    %75 = arith.negf %74 : vector<8x384xf32>
    %76 = math.exp %75 : vector<8x384xf32>
    %cst_26 = arith.constant 1.000000e+00 : f32
    %77 = vector.broadcast %cst_26 : f32 to vector<8x384xf32>
    %78 = arith.addf %77, %76 : vector<8x384xf32>
    %79 = arith.divf %77, %78 : vector<8x384xf32>
    %80 = vector.extract_strided_slice %79 {offsets = [0, 0], sizes = [8, 128], strides = [1, 1]} : vector<8x384xf32> to vector<8x128xf32>
    %81 = vector.extract_strided_slice %79 {offsets = [0, 128], sizes = [8, 128], strides = [1, 1]} : vector<8x384xf32> to vector<8x128xf32>
    %82 = vector.extract_strided_slice %79 {offsets = [0, 256], sizes = [8, 128], strides = [1, 1]} : vector<8x384xf32> to vector<8x128xf32>
    %83 = vector.extract_strided_slice %73 {offsets = [0, 384], sizes = [8, 128], strides = [1, 1]} : vector<8x512xf32> to vector<8x128xf32>
    %84 = math.tanh %83 : vector<8x128xf32>
    %85 = arith.mulf %81, %63 : vector<8x128xf32>
    %86 = arith.mulf %80, %84 : vector<8x128xf32>
    %87 = arith.addf %85, %86 : vector<8x128xf32>
    %88 = math.tanh %87 : vector<8x128xf32>
    %89 = arith.mulf %82, %88 : vector<8x128xf32>
    %90 = arith.truncf %89 : vector<8x128xf32> to vector<8x128xbf16>
    %91 = arith.extui %11 : i1 to i32
    %c0_i32_27 = arith.constant 0 : i32
    %92 = arith.cmpi ne, %91, %c0_i32_27 : i32
    scf.if %92 {
      %216 = arith.addi %15, %c2_i32_22 : i32
      %217 = arith.index_cast %216 : i32 to index
      %c0_57 = arith.constant 0 : index
      %c0_58 = arith.constant 0 : index
      %218 = vector.load %arg9[%217, %c0_57, %c0_58] : memref<8x8x128xbf16, #tpu.memory_space<vmem>>, vector<1x8x128xbf16>
      %219 = vector.shape_cast %218 : vector<1x8x128xbf16> to vector<8x128xbf16>
      %220 = vector.shape_cast %90 : vector<8x128xbf16> to vector<1x8x128xbf16>
      tpu.vector_store %arg9[%217, %c0_57, %c0_58], %220 {strides = array<i32>} : memref<8x8x128xbf16, #tpu.memory_space<vmem>>, vector<1x8x128xbf16>,
    } else {
    }
    %c3_i32 = arith.constant 3 : i32
    %93 = arith.index_cast %c3_i32 : i32 to index
    %c0_28 = arith.constant 0 : index
    %c0_29 = arith.constant 0 : index
    %94 = vector.load %arg10[%93, %c0_28, %c0_29] : memref<8x8x512xf32, #tpu.memory_space<vmem>>, vector<1x8x512xf32>
    %95 = vector.shape_cast %94 : vector<1x8x512xf32> to vector<8x512xf32>
    %cst_30 = arith.constant dense<0.000000e+00> : vector<8x512xf32>
    %96 = tpu.matmul %90, %5, %cst_30 {dimension_numbers = #tpu.dot_dimension_numbers<[1], [0], [0], [1], [0, 0, 1, 1], [], []>} : vector<8x128xbf16>, vector<128x512xbf16>, vector<8x512xf32> -> vector<8x512xf32>
    %97 = arith.addf %95, %96 : vector<8x512xf32>
    %98 = vector.extract_strided_slice %97 {offsets = [0, 0], sizes = [8, 384], strides = [1, 1]} : vector<8x512xf32> to vector<8x384xf32>
    %99 = arith.negf %98 : vector<8x384xf32>
    %100 = math.exp %99 : vector<8x384xf32>
    %cst_31 = arith.constant 1.000000e+00 : f32
    %101 = vector.broadcast %cst_31 : f32 to vector<8x384xf32>
    %102 = arith.addf %101, %100 : vector<8x384xf32>
    %103 = arith.divf %101, %102 : vector<8x384xf32>
    %104 = vector.extract_strided_slice %103 {offsets = [0, 0], sizes = [8, 128], strides = [1, 1]} : vector<8x384xf32> to vector<8x128xf32>
    %105 = vector.extract_strided_slice %103 {offsets = [0, 128], sizes = [8, 128], strides = [1, 1]} : vector<8x384xf32> to vector<8x128xf32>
    %106 = vector.extract_strided_slice %103 {offsets = [0, 256], sizes = [8, 128], strides = [1, 1]} : vector<8x384xf32> to vector<8x128xf32>
    %107 = vector.extract_strided_slice %97 {offsets = [0, 384], sizes = [8, 128], strides = [1, 1]} : vector<8x512xf32> to vector<8x128xf32>
    %108 = math.tanh %107 : vector<8x128xf32>
    %109 = arith.mulf %105, %87 : vector<8x128xf32>
    %110 = arith.mulf %104, %108 : vector<8x128xf32>
    %111 = arith.addf %109, %110 : vector<8x128xf32>
    %112 = math.tanh %111 : vector<8x128xf32>
    %113 = arith.mulf %106, %112 : vector<8x128xf32>
    %114 = arith.truncf %113 : vector<8x128xf32> to vector<8x128xbf16>
    %115 = arith.extui %11 : i1 to i32
    %c0_i32_32 = arith.constant 0 : i32
    %116 = arith.cmpi ne, %115, %c0_i32_32 : i32
    scf.if %116 {
      %216 = arith.addi %15, %c3_i32 : i32
      %217 = arith.index_cast %216 : i32 to index
      %c0_57 = arith.constant 0 : index
      %c0_58 = arith.constant 0 : index
      %218 = vector.load %arg9[%217, %c0_57, %c0_58] : memref<8x8x128xbf16, #tpu.memory_space<vmem>>, vector<1x8x128xbf16>
      %219 = vector.shape_cast %218 : vector<1x8x128xbf16> to vector<8x128xbf16>
      %220 = vector.shape_cast %114 : vector<8x128xbf16> to vector<1x8x128xbf16>
      tpu.vector_store %arg9[%217, %c0_57, %c0_58], %220 {strides = array<i32>} : memref<8x8x128xbf16, #tpu.memory_space<vmem>>, vector<1x8x128xbf16>,
    } else {
    }
    %c4_i32 = arith.constant 4 : i32
    %117 = arith.index_cast %c4_i32 : i32 to index
    %c0_33 = arith.constant 0 : index
    %c0_34 = arith.constant 0 : index
    %118 = vector.load %arg10[%117, %c0_33, %c0_34] : memref<8x8x512xf32, #tpu.memory_space<vmem>>, vector<1x8x512xf32>
    %119 = vector.shape_cast %118 : vector<1x8x512xf32> to vector<8x512xf32>
    %cst_35 = arith.constant dense<0.000000e+00> : vector<8x512xf32>
    %120 = tpu.matmul %114, %5, %cst_35 {dimension_numbers = #tpu.dot_dimension_numbers<[1], [0], [0], [1], [0, 0, 1, 1], [], []>} : vector<8x128xbf16>, vector<128x512xbf16>, vector<8x512xf32> -> vector<8x512xf32>
    %121 = arith.addf %119, %120 : vector<8x512xf32>
    %122 = vector.extract_strided_slice %121 {offsets = [0, 0], sizes = [8, 384], strides = [1, 1]} : vector<8x512xf32> to vector<8x384xf32>
    %123 = arith.negf %122 : vector<8x384xf32>
    %124 = math.exp %123 : vector<8x384xf32>
    %cst_36 = arith.constant 1.000000e+00 : f32
    %125 = vector.broadcast %cst_36 : f32 to vector<8x384xf32>
    %126 = arith.addf %125, %124 : vector<8x384xf32>
    %127 = arith.divf %125, %126 : vector<8x384xf32>
    %128 = vector.extract_strided_slice %127 {offsets = [0, 0], sizes = [8, 128], strides = [1, 1]} : vector<8x384xf32> to vector<8x128xf32>
    %129 = vector.extract_strided_slice %127 {offsets = [0, 128], sizes = [8, 128], strides = [1, 1]} : vector<8x384xf32> to vector<8x128xf32>
    %130 = vector.extract_strided_slice %127 {offsets = [0, 256], sizes = [8, 128], strides = [1, 1]} : vector<8x384xf32> to vector<8x128xf32>
    %131 = vector.extract_strided_slice %121 {offsets = [0, 384], sizes = [8, 128], strides = [1, 1]} : vector<8x512xf32> to vector<8x128xf32>
    %132 = math.tanh %131 : vector<8x128xf32>
    %133 = arith.mulf %129, %111 : vector<8x128xf32>
    %134 = arith.mulf %128, %132 : vector<8x128xf32>
    %135 = arith.addf %133, %134 : vector<8x128xf32>
    %136 = math.tanh %135 : vector<8x128xf32>
    %137 = arith.mulf %130, %136 : vector<8x128xf32>
    %138 = arith.truncf %137 : vector<8x128xf32> to vector<8x128xbf16>
    %139 = arith.extui %11 : i1 to i32
    %c0_i32_37 = arith.constant 0 : i32
    %140 = arith.cmpi ne, %139, %c0_i32_37 : i32
    scf.if %140 {
      %216 = arith.addi %15, %c4_i32 : i32
      %217 = arith.index_cast %216 : i32 to index
      %c0_57 = arith.constant 0 : index
      %c0_58 = arith.constant 0 : index
      %218 = vector.load %arg9[%217, %c0_57, %c0_58] : memref<8x8x128xbf16, #tpu.memory_space<vmem>>, vector<1x8x128xbf16>
      %219 = vector.shape_cast %218 : vector<1x8x128xbf16> to vector<8x128xbf16>
      %220 = vector.shape_cast %138 : vector<8x128xbf16> to vector<1x8x128xbf16>
      tpu.vector_store %arg9[%217, %c0_57, %c0_58], %220 {strides = array<i32>} : memref<8x8x128xbf16, #tpu.memory_space<vmem>>, vector<1x8x128xbf16>,
    } else {
    }
    %c5_i32 = arith.constant 5 : i32
    %141 = arith.index_cast %c5_i32 : i32 to index
    %c0_38 = arith.constant 0 : index
    %c0_39 = arith.constant 0 : index
    %142 = vector.load %arg10[%141, %c0_38, %c0_39] : memref<8x8x512xf32, #tpu.memory_space<vmem>>, vector<1x8x512xf32>
    %143 = vector.shape_cast %142 : vector<1x8x512xf32> to vector<8x512xf32>
    %cst_40 = arith.constant dense<0.000000e+00> : vector<8x512xf32>
    %144 = tpu.matmul %138, %5, %cst_40 {dimension_numbers = #tpu.dot_dimension_numbers<[1], [0], [0], [1], [0, 0, 1, 1], [], []>} : vector<8x128xbf16>, vector<128x512xbf16>, vector<8x512xf32> -> vector<8x512xf32>
    %145 = arith.addf %143, %144 : vector<8x512xf32>
    %146 = vector.extract_strided_slice %145 {offsets = [0, 0], sizes = [8, 384], strides = [1, 1]} : vector<8x512xf32> to vector<8x384xf32>
    %147 = arith.negf %146 : vector<8x384xf32>
    %148 = math.exp %147 : vector<8x384xf32>
    %cst_41 = arith.constant 1.000000e+00 : f32
    %149 = vector.broadcast %cst_41 : f32 to vector<8x384xf32>
    %150 = arith.addf %149, %148 : vector<8x384xf32>
    %151 = arith.divf %149, %150 : vector<8x384xf32>
    %152 = vector.extract_strided_slice %151 {offsets = [0, 0], sizes = [8, 128], strides = [1, 1]} : vector<8x384xf32> to vector<8x128xf32>
    %153 = vector.extract_strided_slice %151 {offsets = [0, 128], sizes = [8, 128], strides = [1, 1]} : vector<8x384xf32> to vector<8x128xf32>
    %154 = vector.extract_strided_slice %151 {offsets = [0, 256], sizes = [8, 128], strides = [1, 1]} : vector<8x384xf32> to vector<8x128xf32>
    %155 = vector.extract_strided_slice %145 {offsets = [0, 384], sizes = [8, 128], strides = [1, 1]} : vector<8x512xf32> to vector<8x128xf32>
    %156 = math.tanh %155 : vector<8x128xf32>
    %157 = arith.mulf %153, %135 : vector<8x128xf32>
    %158 = arith.mulf %152, %156 : vector<8x128xf32>
    %159 = arith.addf %157, %158 : vector<8x128xf32>
    %160 = math.tanh %159 : vector<8x128xf32>
    %161 = arith.mulf %154, %160 : vector<8x128xf32>
    %162 = arith.truncf %161 : vector<8x128xf32> to vector<8x128xbf16>
    %163 = arith.extui %11 : i1 to i32
    %c0_i32_42 = arith.constant 0 : i32
    %164 = arith.cmpi ne, %163, %c0_i32_42 : i32
    scf.if %164 {
      %216 = arith.addi %15, %c5_i32 : i32
      %217 = arith.index_cast %216 : i32 to index
      %c0_57 = arith.constant 0 : index
      %c0_58 = arith.constant 0 : index
      %218 = vector.load %arg9[%217, %c0_57, %c0_58] : memref<8x8x128xbf16, #tpu.memory_space<vmem>>, vector<1x8x128xbf16>
      %219 = vector.shape_cast %218 : vector<1x8x128xbf16> to vector<8x128xbf16>
      %220 = vector.shape_cast %162 : vector<8x128xbf16> to vector<1x8x128xbf16>
      tpu.vector_store %arg9[%217, %c0_57, %c0_58], %220 {strides = array<i32>} : memref<8x8x128xbf16, #tpu.memory_space<vmem>>, vector<1x8x128xbf16>,
    } else {
    }
    %c6_i32 = arith.constant 6 : i32
    %165 = arith.index_cast %c6_i32 : i32 to index
    %c0_43 = arith.constant 0 : index
    %c0_44 = arith.constant 0 : index
    %166 = vector.load %arg10[%165, %c0_43, %c0_44] : memref<8x8x512xf32, #tpu.memory_space<vmem>>, vector<1x8x512xf32>
    %167 = vector.shape_cast %166 : vector<1x8x512xf32> to vector<8x512xf32>
    %cst_45 = arith.constant dense<0.000000e+00> : vector<8x512xf32>
    %168 = tpu.matmul %162, %5, %cst_45 {dimension_numbers = #tpu.dot_dimension_numbers<[1], [0], [0], [1], [0, 0, 1, 1], [], []>} : vector<8x128xbf16>, vector<128x512xbf16>, vector<8x512xf32> -> vector<8x512xf32>
    %169 = arith.addf %167, %168 : vector<8x512xf32>
    %170 = vector.extract_strided_slice %169 {offsets = [0, 0], sizes = [8, 384], strides = [1, 1]} : vector<8x512xf32> to vector<8x384xf32>
    %171 = arith.negf %170 : vector<8x384xf32>
    %172 = math.exp %171 : vector<8x384xf32>
    %cst_46 = arith.constant 1.000000e+00 : f32
    %173 = vector.broadcast %cst_46 : f32 to vector<8x384xf32>
    %174 = arith.addf %173, %172 : vector<8x384xf32>
    %175 = arith.divf %173, %174 : vector<8x384xf32>
    %176 = vector.extract_strided_slice %175 {offsets = [0, 0], sizes = [8, 128], strides = [1, 1]} : vector<8x384xf32> to vector<8x128xf32>
    %177 = vector.extract_strided_slice %175 {offsets = [0, 128], sizes = [8, 128], strides = [1, 1]} : vector<8x384xf32> to vector<8x128xf32>
    %178 = vector.extract_strided_slice %175 {offsets = [0, 256], sizes = [8, 128], strides = [1, 1]} : vector<8x384xf32> to vector<8x128xf32>
    %179 = vector.extract_strided_slice %169 {offsets = [0, 384], sizes = [8, 128], strides = [1, 1]} : vector<8x512xf32> to vector<8x128xf32>
    %180 = math.tanh %179 : vector<8x128xf32>
    %181 = arith.mulf %177, %159 : vector<8x128xf32>
    %182 = arith.mulf %176, %180 : vector<8x128xf32>
    %183 = arith.addf %181, %182 : vector<8x128xf32>
    %184 = math.tanh %183 : vector<8x128xf32>
    %185 = arith.mulf %178, %184 : vector<8x128xf32>
    %186 = arith.truncf %185 : vector<8x128xf32> to vector<8x128xbf16>
    %187 = arith.extui %11 : i1 to i32
    %c0_i32_47 = arith.constant 0 : i32
    %188 = arith.cmpi ne, %187, %c0_i32_47 : i32
    scf.if %188 {
      %216 = arith.addi %15, %c6_i32 : i32
      %217 = arith.index_cast %216 : i32 to index
      %c0_57 = arith.constant 0 : index
      %c0_58 = arith.constant 0 : index
      %218 = vector.load %arg9[%217, %c0_57, %c0_58] : memref<8x8x128xbf16, #tpu.memory_space<vmem>>, vector<1x8x128xbf16>
      %219 = vector.shape_cast %218 : vector<1x8x128xbf16> to vector<8x128xbf16>
      %220 = vector.shape_cast %186 : vector<8x128xbf16> to vector<1x8x128xbf16>
      tpu.vector_store %arg9[%217, %c0_57, %c0_58], %220 {strides = array<i32>} : memref<8x8x128xbf16, #tpu.memory_space<vmem>>, vector<1x8x128xbf16>,
    } else {
    }
    %c7_i32 = arith.constant 7 : i32
    %189 = arith.index_cast %c7_i32 : i32 to index
    %c0_48 = arith.constant 0 : index
    %c0_49 = arith.constant 0 : index
    %190 = vector.load %arg10[%189, %c0_48, %c0_49] : memref<8x8x512xf32, #tpu.memory_space<vmem>>, vector<1x8x512xf32>
    %191 = vector.shape_cast %190 : vector<1x8x512xf32> to vector<8x512xf32>
    %cst_50 = arith.constant dense<0.000000e+00> : vector<8x512xf32>
    %192 = tpu.matmul %186, %5, %cst_50 {dimension_numbers = #tpu.dot_dimension_numbers<[1], [0], [0], [1], [0, 0, 1, 1], [], []>} : vector<8x128xbf16>, vector<128x512xbf16>, vector<8x512xf32> -> vector<8x512xf32>
    %193 = arith.addf %191, %192 : vector<8x512xf32>
    %194 = vector.extract_strided_slice %193 {offsets = [0, 0], sizes = [8, 384], strides = [1, 1]} : vector<8x512xf32> to vector<8x384xf32>
    %195 = arith.negf %194 : vector<8x384xf32>
    %196 = math.exp %195 : vector<8x384xf32>
    %cst_51 = arith.constant 1.000000e+00 : f32
    %197 = vector.broadcast %cst_51 : f32 to vector<8x384xf32>
    %198 = arith.addf %197, %196 : vector<8x384xf32>
    %199 = arith.divf %197, %198 : vector<8x384xf32>
    %200 = vector.extract_strided_slice %199 {offsets = [0, 0], sizes = [8, 128], strides = [1, 1]} : vector<8x384xf32> to vector<8x128xf32>
    %201 = vector.extract_strided_slice %199 {offsets = [0, 128], sizes = [8, 128], strides = [1, 1]} : vector<8x384xf32> to vector<8x128xf32>
    %202 = vector.extract_strided_slice %199 {offsets = [0, 256], sizes = [8, 128], strides = [1, 1]} : vector<8x384xf32> to vector<8x128xf32>
    %203 = vector.extract_strided_slice %193 {offsets = [0, 384], sizes = [8, 128], strides = [1, 1]} : vector<8x512xf32> to vector<8x128xf32>
    %204 = math.tanh %203 : vector<8x128xf32>
    %205 = arith.mulf %201, %183 : vector<8x128xf32>
    %206 = arith.mulf %200, %204 : vector<8x128xf32>
    %207 = arith.addf %205, %206 : vector<8x128xf32>
    %208 = math.tanh %207 : vector<8x128xf32>
    %209 = arith.mulf %202, %208 : vector<8x128xf32>
    %210 = arith.truncf %209 : vector<8x128xf32> to vector<8x128xbf16>
    %211 = arith.extui %11 : i1 to i32
    %c0_i32_52 = arith.constant 0 : i32
    %212 = arith.cmpi ne, %211, %c0_i32_52 : i32
    scf.if %212 {
      %216 = arith.addi %15, %c7_i32 : i32
      %217 = arith.index_cast %216 : i32 to index
      %c0_57 = arith.constant 0 : index
      %c0_58 = arith.constant 0 : index
      %218 = vector.load %arg9[%217, %c0_57, %c0_58] : memref<8x8x128xbf16, #tpu.memory_space<vmem>>, vector<1x8x128xbf16>
      %219 = vector.shape_cast %218 : vector<1x8x128xbf16> to vector<8x128xbf16>
      %220 = vector.shape_cast %210 : vector<8x128xbf16> to vector<1x8x128xbf16>
      tpu.vector_store %arg9[%217, %c0_57, %c0_58], %220 {strides = array<i32>} : memref<8x8x128xbf16, #tpu.memory_space<vmem>>, vector<1x8x128xbf16>,
    } else {
    }
    %c8_i32_53 = arith.constant 8 : i32
    %c1_i32_54 = arith.constant 1 : i32
    %c1_i32_55 = arith.constant 1 : i32
    %213 = arith.cmpi eq, %arg1, %c1_i32_55 : i32
    %214 = arith.extui %213 : i1 to i32
    %c0_i32_56 = arith.constant 0 : i32
    %215 = arith.cmpi ne, %214, %c0_i32_56 : i32
    scf.if %215 {
      %c0_57 = arith.constant 0 : index
      %c0_58 = arith.constant 0 : index
      %216 = vector.load %arg6[%c0_57, %c0_58] : memref<128x128xbf16, #tpu.memory_space<vmem>>, vector<128x128xbf16>
      %cst_59 = arith.constant dense<0.000000e+00> : vector<8x128xf32>
      %217 = tpu.matmul %210, %216, %cst_59 {dimension_numbers = #tpu.dot_dimension_numbers<[1], [0], [0], [1], [0, 0, 1, 1], [], []>} : vector<8x128xbf16>, vector<128x128xbf16>, vector<8x128xf32> -> vector<8x128xf32>
      %c0_60 = arith.constant 0 : index
      %c0_61 = arith.constant 0 : index
      %218 = vector.load %arg7[%c0_60, %c0_61] : memref<1x128xf32, #tpu.memory_space<vmem>>, vector<1x128xf32>
      %219 = vector.broadcast %218 : vector<1x128xf32> to vector<8x128xf32>
      %220 = arith.addf %217, %219 : vector<8x128xf32>
      %c0_62 = arith.constant 0 : index
      %c0_63 = arith.constant 0 : index
      %221 = vector.load %arg8[%c0_62, %c0_63] : memref<8x128xf32, #tpu.memory_space<vmem>>, vector<8x128xf32>
      tpu.vector_store %arg8[%c0_62, %c0_63], %220 {strides = array<i32>} : memref<8x128xf32, #tpu.memory_space<vmem>>, vector<8x128xf32>,
    } else {
    }
    return
  }
  func.func @transform_0(%arg0: i32, %arg1: i32) -> (i32, i32, i32, i32) {
    %c0_i32 = arith.constant 0 : i32
    %c0_i32_0 = arith.constant 0 : i32
    %c0_i32_1 = arith.constant 0 : i32
    %c0_i32_2 = arith.constant 0 : i32
    return %arg0, %c0_i32, %c0_i32_0, %c0_i32_1 : i32, i32, i32, i32
  }
  func.func @transform_1(%arg0: i32, %arg1: i32) -> (i32, i32, i32) {
    %c0_i32 = arith.constant 0 : i32
    %c0_i32_0 = arith.constant 0 : i32
    %c0_i32_1 = arith.constant 0 : i32
    %c0_i32_2 = arith.constant 0 : i32
    return %c0_i32, %c0_i32_0, %c0_i32_1 : i32, i32, i32
  }
  func.func @transform_2(%arg0: i32, %arg1: i32) -> (i32, i32, i32) {
    %c0_i32 = arith.constant 0 : i32
    %c0_i32_0 = arith.constant 0 : i32
    %c0_i32_1 = arith.constant 0 : i32
    %c0_i32_2 = arith.constant 0 : i32
    return %c0_i32, %c0_i32_0, %c0_i32_1 : i32, i32, i32
  }
  func.func @transform_3(%arg0: i32, %arg1: i32) -> (i32, i32, i32) {
    %c0_i32 = arith.constant 0 : i32
    %c0_i32_0 = arith.constant 0 : i32
    %c0_i32_1 = arith.constant 0 : i32
    %c0_i32_2 = arith.constant 0 : i32
    return %c0_i32, %c0_i32_0, %c0_i32_1 : i32, i32, i32
  }
  func.func @transform_4(%arg0: i32, %arg1: i32) -> (i32, i32) {
    %c0_i32 = arith.constant 0 : i32
    %c0_i32_0 = arith.constant 0 : i32
    %c0_i32_1 = arith.constant 0 : i32
    return %c0_i32, %c0_i32_0 : i32, i32
  }
  func.func @transform_5(%arg0: i32, %arg1: i32) -> (i32, i32) {
    %c0_i32 = arith.constant 0 : i32
    %c0_i32_0 = arith.constant 0 : i32
    %c0_i32_1 = arith.constant 0 : i32
    return %c0_i32, %c0_i32_0 : i32, i32
  }
  func.func @transform_6(%arg0: i32, %arg1: i32) -> (i32, i32) {
    %c0_i32 = arith.constant 0 : i32
    %c0_i32_0 = arith.constant 0 : i32
    return %arg0, %c0_i32 : i32, i32
  }
}

</mosaic_0001>

<bundles_post_ra>
// kernel: tpu_custom_call.1
= control target key start
LH: loop header
LB: loop body
LE: loop exit
PB: predicated region body
PF: predicated region fallthrough
CT: control target
= control target key end

     0   :  { %11 = vsyncpa [#allocation5], 0  ;;  %s4267_s0 = inlined_call_operand.hbm [shape: bf16[1,8,8,128], index: 0, kind: input, shape index: {}]   ;;  %s4268_s1 = inlined_call_operand.hbm [shape: bf16[2,128,512], index: 1, kind: input, shape index: {}]   ;;  %s4269_s2 = inlined_call_operand.hbm [shape: bf16[2,128,512], index: 2, kind: input, shape index: {}]   ;;  %s4270_s3 = inlined_call_operand.vmem [shape: f32[2,1,512], index: 3, kind: input, shape index: {}]   ;;  %s4271_s4 = inlined_call_operand.hbm [shape: bf16[128,128], index: 4, kind: input, shape index: {}]   ;;  %s4272_s5 = inlined_call_operand.vmem [shape: f32[1,128], index: 5, kind: input, shape index: {}]   ;;  %s4273_s6 = inlined_call_operand.hbm [shape: f32[8,128], index: 6, kind: output, shape index: {}]  }
   0x1   :  { %12 = vsyncpa [#allocation8], 0 }
   0x2   :  { %13 = vsyncpa [#allocation11], 0 }
   0x3   :  { %14 = vsyncpa [#allocation6], 0  ;;  %s3176_s21 = smov 0   ;;  %s3178_s22 = smov 0  }
   0x4   :  { %s3180_s23 = smov 0  }
   0x5 LB: > { %s3127_s24 = smov [#allocation7]   ;;  %s4277_s26 = sadd.s32 4294967295, %s3125_s23   ;;  %s3125_s23 = sphi %s3180_s23, %s20_s23   ;;  %s3121_s22 = sphi %s3178_s22, %s4353_s22   ;;  %s3117_s21 = sphi %s3176_s21, %s4352_s21  }
   0x6   : > { %s222_s25 = sshll.u32 %s3127_s24, 4  ;;  %p2527_p0 = scmp.ge.s32.totalorder %s3125_s23, 1  ;;  %s3200_s25 = int_to_ptr.vmem [resolvable:$true] %s222_s25 }
   0x7   : > { %p194_p1 = scmp.lt.s32.totalorder %s3125_s23, 3  ;;  %p3196_p2 = scmp.eq.s32.totalorder %s4277_s26, 0 }
   0x8   : > { %s29_s30 = sadd.s32 1, %s3121_s22  ;;  %s3128_s8 = smov [#allocation4]  }
   0x9   : > { %s4300_s27 = scalar_select %p3196_p2, 1, 0 }
   0xa   : > { %p3202_p3 = pnand %p2527_p0, %p194_p1  ;;  %p3215_p6 = scmp.ge.s32.totalorder %s29_s30, 2 }
   0xb   : > { %s209_s9 = sshll.u32 %s3128_s8, 4  ;;  %s2949_s12 = scalar_lea.hbm %s4268_s1, 8192  ;;  %s210_s9 = int_to_ptr.vmem [resolvable:$true] %s209_s9 }
   0xc   : > { %s4301_s28 = scalar_select %p3202_p3, 1, 0 }
   0xd   : > { %p2744_p4 = pneg %p3202_p3  ;;  %p2950_p7 = scmp.ne.s32.totalorder %s4268_s1, %s2949_s12 }
   0xe   : > { %p2956_p11 = scmp.lt.u32.totalorder %s2949_s12, %s4268_s1 }
   0xf   : > { %p3210_p5 = pnand %p3196_p2, %p2744_p4 }
  0x11   : > { %p3227_p8 = pneg %p3210_p5 }
  0x13   : > { %p2952_p9 = pnand %p3227_p8, %p2950_p7 }
  0x15   : > { %p2953_p10 = pneg %p2952_p9 }
  0x17   : > { %p2958_p12 = pnand %p2956_p11, %p2953_p10 }
  0x19   : > { %2961 = shalt.err (!%p2958_p12)
}
  0x1a   : > { %s2962_s18 = scalar_lea.vmem %s3200_s25, 8192  ;;  %p2970_p4 = scmp.lt.s32.totalorder %s3200_s25, %s3200_s25 }
  0x1b   : > { %p2963_p13 = scmp.ne.s32.totalorder %s3200_s25, %s2962_s18  ;;  %p2971_p2 = scmp.lt.s32.totalorder %s2962_s18, %s2962_s18 }
  0x1d   : > { %p2965_p0 = pnand %p2963_p13, %p3227_p8  ;;  %p2972_p7 = por %p2971_p2, %p2970_p4 }
  0x1f   : > { %p2966_p1 = pneg %p2965_p0 }
  0x21   : > { %p2973_p9 = pnand %p2972_p7, %p2966_p1 }
  0x23   : > { %2976 = shalt.err (!%p2973_p9)
}
  0x24   : > { %s4278_s19 = smov 256   ;;  %s4279_s20 = smov 16  }
  0x25   : > { %2750 = dma.hbm_to_vmem [thread:$0]  (!%p3210_p5), %s4268_s1, 8192, %s3200_s25, [#allocation8], %s4278_s19, %s4278_s19, %s4279_s20  }
  0x26   : > { %s4355_s30 = smov (%p3215_p6, %s29_s30), 0  ;;  %s2977_s12 = scalar_lea.hbm %s4267_s0, 512 }
  0x27   : > { %p2978_p2 = scmp.ne.s32.totalorder %s4267_s0, %s2977_s12  ;;  %p2984_p12 = scmp.lt.u32.totalorder %s2977_s12, %s4267_s0 }
  0x29   : > { %p2980_p10 = pnand %p2978_p2, %p3227_p8 }
  0x2b   : > { %p2981_p11 = pneg %p2980_p10 }
  0x2d   : > { %p2986_p13 = pnand %p2984_p12, %p2981_p11 }
  0x2f   : > { %2989 = shalt.err (!%p2986_p13)
}
  0x30   : > { %s2990_s25 = scalar_lea.vmem %s210_s9, 512  ;;  %p2998_p4 = scmp.lt.s32.totalorder %s210_s9, %s210_s9 }
  0x31   : > { %p2991_p6 = scmp.ne.s32.totalorder %s210_s9, %s2990_s25  ;;  %p2999_p7 = scmp.lt.s32.totalorder %s2990_s25, %s2990_s25 }
  0x33   : > { %p2993_p0 = pnand %p2991_p6, %p3227_p8  ;;  %p3000_p9 = por %p2999_p7, %p2998_p4 }
  0x35   : > { %p2994_p1 = pneg %p2993_p0 }
  0x37   : > { %p3001_p3 = pnand %p3000_p9, %p2994_p1 }
  0x39   : > { %3004 = shalt.err (!%p3001_p3)
}
  0x3a   : > { %s3131_s7 = smov 64   ;;  %s3132_s18 = smov 4  }
  0x3b   : > { %2747 = dma.hbm_to_vmem [thread:$0]  (!%p3210_p5), %s4267_s0, 512, %s210_s9, [#allocation5], %s3131_s7, %s3131_s7, %s3132_s18  }
  0x3c   : > { %s3133_s10 = smov [#allocation9]   ;;  %s3134_s12 = smov [#allocation10]  }
  0x3d   : > { %s235_s11 = sshll.u32 %s3133_s10, 4  ;;  %s251_s13 = sshll.u32 %s3134_s12, 4  ;;  %s236_s11 = int_to_ptr.vmem [resolvable:$true] %s235_s11  ;;  %s252_s13 = int_to_ptr.vmem [resolvable:$true] %s251_s13 }
  0x3e   : > { %s3005_s17 = scalar_lea.hbm %s4269_s2, 8192 }
  0x3f   : > { %p3006_p3 = scmp.ne.s32.totalorder %s4269_s2, %s3005_s17  ;;  %p3012_p11 = scmp.lt.u32.totalorder %s3005_s17, %s4269_s2 }
  0x41   : > { %p3008_p2 = pnand %p3006_p3, %p3227_p8 }
  0x43   : > { %p3009_p10 = pneg %p3008_p2 }
  0x45   : > { %p3014_p12 = pnand %p3012_p11, %p3009_p10 }
  0x47   : > { %3017 = shalt.err (!%p3014_p12)
}
  0x48   : > { %s3018_s9 = scalar_lea.vmem %s236_s11, 8192  ;;  %p3026_p1 = scmp.lt.s32.totalorder %s236_s11, %s236_s11 }
  0x49   : > { %p3019_p13 = scmp.ne.s32.totalorder %s236_s11, %s3018_s9  ;;  %p3027_p4 = scmp.lt.s32.totalorder %s3018_s9, %s3018_s9 }
  0x4b   : > { %p3021_p6 = pnand %p3019_p13, %p3227_p8  ;;  %p3028_p7 = por %p3027_p4, %p3026_p1 }
  0x4d   : > { %p3022_p0 = pneg %p3021_p6 }
  0x4f   : > { %p3029_p9 = pnand %p3028_p7, %p3022_p0 }
  0x51   : > { %3032 = shalt.err (!%p3029_p9)
}
  0x52   : > { %s4305_s26 = smov 16   ;;  %s4306_s24 = smov 256  }
  0x53   : > { %2753 = dma.hbm_to_vmem [thread:$0]  (!%p3210_p5), %s4269_s2, 8192, %s236_s11, [#allocation8], %s4306_s24, %s4306_s24, %s4305_s26  }
  0x54   : > { %s3033_s12 = scalar_lea.hbm %s4271_s4, 1024 }
  0x55   : > { %p3034_p3 = scmp.ne.s32.totalorder %s4271_s4, %s3033_s12  ;;  %p3040_p11 = scmp.lt.u32.totalorder %s3033_s12, %s4271_s4 }
  0x57   : > { %p3036_p2 = pnand %p3034_p3, %p3227_p8 }
  0x59   : > { %p3037_p10 = pneg %p3036_p2 }
  0x5b   : > { %p3042_p12 = pnand %p3040_p11, %p3037_p10 }
  0x5d   : > { %3045 = shalt.err (!%p3042_p12)
}
  0x5e   : > { %s3046_s9 = scalar_lea.vmem %s252_s13, 1024  ;;  %p3054_p1 = scmp.lt.s32.totalorder %s252_s13, %s252_s13 }
  0x5f   : > { %p3047_p13 = scmp.ne.s32.totalorder %s252_s13, %s3046_s9  ;;  %p3055_p4 = scmp.lt.s32.totalorder %s3046_s9, %s3046_s9 }
  0x61   : > { %p3049_p6 = pnand %p3047_p13, %p3227_p8  ;;  %p3056_p7 = por %p3055_p4, %p3054_p1 }
  0x63   : > { %p3050_p0 = pneg %p3049_p6 }
  0x65   : > { %p3057_p9 = pnand %p3056_p7, %p3050_p0 }
  0x67   : > { %3060 = shalt.err (!%p3057_p9)
}
  0x68   : > { %2756 = dma.hbm_to_vmem [thread:$0]  (!%p3210_p5), %s4271_s4, 1024, %s252_s13, [#allocation11], %s3131_s7, %s3131_s7, %s3132_s18  }
  0x69   : > { %p4307_p3 = scmp.ne.s32.totalorder %s4301_s28, 0 }
  0x6b   : > { %270 = sbr.rel (%p4307_p3) target bundleno = 3319 (0xcf7), region = 44 }
  0x72   : > { %p4308_p8 = scmp.ne.s32.totalorder %s4300_s27, 0 }
  0x74   : > { %3100 = dma.done.wait (%p4308_p8), [#allocation5], 512  }
  0x75   : > { %3102 = vsyncadd (%p4308_p8), [#allocation5], 4294966784 }
  0x76   : > { %3104 = dma.done.wait (%p4308_p8), [#allocation8], 16384  }
  0x77   : > { %3106 = vsyncadd (%p4308_p8), [#allocation8], 4294950912 }
  0x78   : > { %3108 = dma.done.wait (%p4308_p8), [#allocation11], 1024  }
  0x79   : > { %3110 = vsyncadd (%p4308_p8), [#allocation11], 4294966272  ;;  %s2693_s28 = sshll.u32 %s3117_s21, 8  ;;  %s376_s29 = sadd.s32 1, %s3117_s21 }
  0x7a   : > { %s3336_s15 = scalar_lea.vmem [#allocation7], %s2693_s28  ;;  %s3436_s27 = scalar_lea.vmem [#allocation9], %s2693_s28 }
  0x7b   : > { %v3339_v0 = vld [vmem:[%s3336_s15] sm:$0xff]  ;;  %v3342_v1 = vld [vmem:[%s3336_s15 + $0x8] sm:$0xff]  ;;  %v3345_v2 = vld [vmem:[%s3336_s15 + $0x10] sm:$0xff]  ;;  %s2540_s7 = sshll.u32 %s3117_s21, 2  ;;  %p2541_p5 = scmp.ne.s32.totalorder %s3117_s21, 0 }
  0x7c   : > { %v3348_v3 = vld [vmem:[%s3336_s15 + $0x18] sm:$0xff]  ;;  %v3351_v4 = vld [vmem:[%s3336_s15 + $0x20] sm:$0xff]  ;;  %v3354_v5 = vld [vmem:[%s3336_s15 + $0x28] sm:$0xff]  ;;  %s373_s24 = scalar_lea.vmem %s4270_s3, %s2540_s7 }
  0x7d   : > { %v3357_v6 = vld [vmem:[%s3336_s15 + $0x30] sm:$0xff]  ;;  %v3360_v7 = vld [vmem:[%s3336_s15 + $0x38] sm:$0xff]  ;;  %v3363_v8 = vld [vmem:[%s3336_s15 + $0x40] sm:$0xff] }
  0x7e   : > { %v3366_v9 = vld [vmem:[%s3336_s15 + $0x48] sm:$0xff]  ;;  %v3369_v10 = vld [vmem:[%s3336_s15 + $0x50] sm:$0xff]  ;;  %v3372_v11 = vld [vmem:[%s3336_s15 + $0x58] sm:$0xff] }
  0x7f   : > { %v3375_v12 = vld [vmem:[%s3336_s15 + $0x60] sm:$0xff]  ;;  %v3378_v13 = vld [vmem:[%s3336_s15 + $0x68] sm:$0xff]  ;;  %v3381_v14 = vld [vmem:[%s3336_s15 + $0x70] sm:$0xff] }
  0x80   : > { %v3384_v15 = vld [vmem:[%s3336_s15 + $0x78] sm:$0xff]  ;;  %v3387_v16 = vld [vmem:[%s3336_s15 + $0x80] sm:$0xff]  ;;  %v3390_v17 = vld [vmem:[%s3336_s15 + $0x88] sm:$0xff] }
  0x81   : > { %v3393_v18 = vld [vmem:[%s3336_s15 + $0x90] sm:$0xff]  ;;  %v3396_v19 = vld [vmem:[%s3336_s15 + $0x98] sm:$0xff]  ;;  %v3399_v20 = vld [vmem:[%s3336_s15 + $0xa0] sm:$0xff] }
  0x82   : > { %v3402_v21 = vld [vmem:[%s3336_s15 + $0xa8] sm:$0xff]  ;;  %v3405_v22 = vld [vmem:[%s3336_s15 + $0xb0] sm:$0xff]  ;;  %v3408_v23 = vld [vmem:[%s3336_s15 + $0xb8] sm:$0xff] }
  0x83   : > { %v3411_v24 = vld [vmem:[%s3336_s15 + $0xc0] sm:$0xff]  ;;  %v3414_v25 = vld [vmem:[%s3336_s15 + $0xc8] sm:$0xff]  ;;  %v3417_v26 = vld [vmem:[%s3336_s15 + $0xd0] sm:$0xff] }
  0x84   : > { %v3420_v27 = vld [vmem:[%s3336_s15 + $0xd8] sm:$0xff]  ;;  %v3423_v28 = vld [vmem:[%s3336_s15 + $0xe0] sm:$0xff]  ;;  %v3426_v29 = vld [vmem:[%s3336_s15 + $0xe8] sm:$0xff] }
  0x85   : > { %v3429_v30 = vld [vmem:[%s3336_s15 + $0xf0] sm:$0xff]  ;;  %v3432_v31 = vld [vmem:[%s3336_s15 + $0xf8] sm:$0xff]  ;;  %v3439_v32 = vld [vmem:[%s3436_s27] sm:$0xff] }
  0x86   : > { %v3442_v33 = vld [vmem:[%s3436_s27 + $0x8] sm:$0xff]  ;;  %v3445_v34 = vld [vmem:[%s3436_s27 + $0x10] sm:$0xff]  ;;  %v3448_v35 = vld [vmem:[%s3436_s27 + $0x18] sm:$0xff] }
  0x87   : > { %v3451_v36 = vld [vmem:[%s3436_s27 + $0x20] sm:$0xff]  ;;  %v3454_v37 = vld [vmem:[%s3436_s27 + $0x28] sm:$0xff]  ;;  %v3457_v38 = vld [vmem:[%s3436_s27 + $0x30] sm:$0xff] }
  0x88   : > { %v3460_v39 = vld [vmem:[%s3436_s27 + $0x38] sm:$0xff]  ;;  %v3463_v40 = vld [vmem:[%s3436_s27 + $0x40] sm:$0xff]  ;;  %v3466_v41 = vld [vmem:[%s3436_s27 + $0x48] sm:$0xff] }
  0x89   : > { %v3469_v42 = vld [vmem:[%s3436_s27 + $0x50] sm:$0xff]  ;;  %v3472_v43 = vld [vmem:[%s3436_s27 + $0x58] sm:$0xff]  ;;  %v3475_v44 = vld [vmem:[%s3436_s27 + $0x60] sm:$0xff] }
  0x8a   : > { %4309 = vst [vmem:[#allocation17_spill] sm:$0xff] %v3475_v44  ;;  %v3478_v45 = vld [vmem:[%s3436_s27 + $0x68] sm:$0xff]  ;;  %v3481_v46 = vld [vmem:[%s3436_s27 + $0x70] sm:$0xff]  ;;  %v3484_v47 = vld [vmem:[%s3436_s27 + $0x78] sm:$0xff] }
  0x8b   : > { %4310 = vst [vmem:[#allocation18_spill] sm:$0xff] %v3478_v45  ;;  %4311 = vst [vmem:[#allocation19_spill] sm:$0xff] %v3481_v46  ;;  %v3488_v48 = vld [vmem:[%s3436_s27 + $0x80] sm:$0xff]  ;;  %v3491_v49 = vld [vmem:[%s3436_s27 + $0x88] sm:$0xff] }
  0x8c   : > { %4312 = vst [vmem:[#allocation20_spill] sm:$0xff] %v3484_v47  ;;  %4313 = vst [vmem:[#allocation21_spill] sm:$0xff] %v3488_v48  ;;  %v3494_v50 = vld [vmem:[%s3436_s27 + $0x90] sm:$0xff]  ;;  %v3497_v51 = vld [vmem:[%s3436_s27 + $0x98] sm:$0xff] }
  0x8d   : > { %4314 = vst [vmem:[#allocation22_spill] sm:$0xff] %v3491_v49  ;;  %4315 = vst [vmem:[#allocation23_spill] sm:$0xff] %v3494_v50  ;;  %v3500_v52 = vld [vmem:[%s3436_s27 + $0xa0] sm:$0xff]  ;;  %v3503_v53 = vld [vmem:[%s3436_s27 + $0xa8] sm:$0xff] }
  0x8e   : > { %4316 = vst [vmem:[#allocation24_spill] sm:$0xff] %v3497_v51  ;;  %4317 = vst [vmem:[#allocation25_spill] sm:$0xff] %v3500_v52  ;;  %v3506_v54 = vld [vmem:[%s3436_s27 + $0xb0] sm:$0xff]  ;;  %v3509_v55 = vld [vmem:[%s3436_s27 + $0xb8] sm:$0xff]  ;;  %380 = sbr.rel (%p2541_p5) target bundleno = 422 (0x1a6), region = 64  ;;  %v2557_v52 = vcombine.high (!%p2541_p5), %v3366_v9, %v3372_v11 }
  0x8f   : > { %4318 = vst [vmem:[#allocation26_spill] sm:$0xff] %v3503_v53  ;;  %4319 = vst [vmem:[#allocation27_spill] sm:$0xff] %v3506_v54  ;;  %v3512_v56 = vld [vmem:[%s3436_s27 + $0xc0] sm:$0xff]  ;;  %v3518_v57 = vld [vmem:[%s3436_s27 + $0xc8] sm:$0xff]  ;;  %v3135_v54 = vmov (!%p2541_p5), 0  }
  0x90   : > { %4320 = vst [vmem:[#allocation28_spill] sm:$0xff] %v3509_v55  ;;  %4321 = vst [vmem:[#allocation29_spill] sm:$0xff] %v3512_v56  ;;  %v3521_v58 = vld [vmem:[%s3436_s27 + $0xd0] sm:$0xff]  ;;  %v3524_v59 = vld [vmem:[%s3436_s27 + $0xd8] sm:$0xff]  ;;  %v2549_v56 = vcombine.high (!%p2541_p5), %v3342_v1, %v3348_v3  ;;  %v2555_v55 = vcombine.high (!%p2541_p5), %v3363_v8, %v3369_v10  ;;  %626 = vmatprep.mubr.bf16.mxu0 (!%p2541_p5), %v3135_v54  ;;  %699 = vmatprep.mubr.bf16.mxu1 (!%p2541_p5), %v3135_v54 }
  0x91   : > { %4322 = vst [vmem:[#allocation30_spill] sm:$0xff] %v3518_v57  ;;  %4323 = vst [vmem:[#allocation31_spill] sm:$0xff] %v3521_v58  ;;  %v3527_v60 = vld [vmem:[%s3436_s27 + $0xe0] sm:$0xff]  ;;  %v3530_v61 = vld [vmem:[%s3436_s27 + $0xe8] sm:$0xff]  ;;  %v2547_v57 = vcombine.high (!%p2541_p5), %v3339_v0, %v3345_v2  ;;  %v2552_v58 = vcombine.low (!%p2541_p5), %v3354_v5, %v3360_v7 }
  0x92   : > { %4324 = vst [vmem:[#allocation32_spill] sm:$0xff] %v3524_v59  ;;  %4325 = vst [vmem:[#allocation33_spill] sm:$0xff] %v3527_v60  ;;  %v3533_v62 = vld [vmem:[%s3436_s27 + $0xf0] sm:$0xff]  ;;  %v3536_v63 = vld [vmem:[%s3436_s27 + $0xf8] sm:$0xff]  ;;  %v2546_v60 = vcombine.low (!%p2541_p5), %v3339_v0, %v3345_v2  ;;  %667 = vmatprep.subr.bf16.mxu1 (!%p2541_p5), %v2549_v56  ;;  %v2550_v59 = vcombine.low (!%p2541_p5), %v3351_v4, %v3357_v6  ;;  %v2554_v56 = vcombine.low (!%p2541_p5), %v3363_v8, %v3369_v10 }
  0x93   : > { %4326 = vst [vmem:[#allocation34_spill] sm:$0xff] %v3530_v61  ;;  %4327 = vst [vmem:[#allocation35_spill] sm:$0xff] %v3533_v62  ;;  %v3538_v53 = vld [vmem:[%s373_s24] sm:$0xf]  ;;  %v2548_v61 = vcombine.low (!%p2541_p5), %v3342_v1, %v3348_v3  ;;  %v2553_v62 = vcombine.high (!%p2541_p5), %v3354_v5, %v3360_v7  ;;  %594 = vmatprep.subr.bf16.mxu0 (!%p2541_p5), %v2547_v57  ;;  %v2556_v57 = vcombine.low (!%p2541_p5), %v3366_v9, %v3372_v11 }
  0x94   : > { %4328 = vst [vmem:[#allocation36_spill] sm:$0xff] %v3536_v63  ;;  %v2551_v63 = vcombine.high (!%p2541_p5), %v3351_v4, %v3357_v6  ;;  %595 = vmatpush1.bf16.msra.mxu0 (!%p2541_p5), %v2546_v60  ;;  %v2559_v60 = vcombine.high (!%p2541_p5), %v3375_v12, %v3381_v14 }
  0x95   : > { %668 = vmatpush1.bf16.msra.mxu1 %v2548_v61  ;;  %v2561_v61 = vcombine.high %v3378_v13, %v3384_v15 }
  0x96   : > { %596 = vmatprep.subr.bf16.mxu0 %v2551_v63  ;;  %669 = vmatprep.subr.bf16.mxu1 %v2553_v62  ;;  %v2562_v62 = vcombine.low %v3387_v16, %v3393_v18  ;;  %v2564_v63 = vcombine.low %v3390_v17, %v3396_v19 }
  0x98   : > { %597 = vmatpush1.bf16.msra.mxu0 %v2550_v59  ;;  %v2558_v59 = vcombine.low %v3375_v12, %v3381_v14 }
  0x99   : > { %670 = vmatpush1.bf16.msra.mxu1 %v2552_v58  ;;  %598 = vmatprep.subr.bf16.mxu0 %v2555_v55  ;;  %v2560_v58 = vcombine.low %v3378_v13, %v3384_v15  ;;  %v2563_v55 = vcombine.high %v3387_v16, %v3393_v18 }
  0x9a   : > { %671 = vmatprep.subr.bf16.mxu1 %v2557_v52  ;;  %v2565_v52 = vcombine.high %v3390_v17, %v3396_v19 }
  0x9c   : > { %599 = vmatpush1.bf16.msra.mxu0 %v2554_v56  ;;  %v2567_v56 = vcombine.high %v3399_v20, %v3405_v22 }
  0x9d   : > { %672 = vmatpush1.bf16.msra.mxu1 %v2556_v57  ;;  %600 = vmatprep.subr.bf16.mxu0 %v2559_v60  ;;  %v2569_v57 = vcombine.high %v3402_v21, %v3408_v23  ;;  %v2566_v60 = vcombine.low %v3399_v20, %v3405_v22 }
  0x9e   : > { %673 = vmatprep.subr.bf16.mxu1 %v2561_v61  ;;  %v2568_v61 = vcombine.low %v3402_v21, %v3408_v23 }
  0xa0   : > { %601 = vmatpush1.bf16.msra.mxu0 %v2558_v59  ;;  %v2571_v59 = vcombine.high %v3411_v24, %v3417_v26 }
  0xa1   : > { %674 = vmatpush1.bf16.msra.mxu1 %v2560_v58  ;;  %602 = vmatprep.subr.bf16.mxu0 %v2563_v55  ;;  %v2573_v58 = vcombine.high %v3414_v25, %v3420_v27  ;;  %v2570_v55 = vcombine.low %v3411_v24, %v3417_v26 }
  0xa2   : > { %675 = vmatprep.subr.bf16.mxu1 %v2565_v52  ;;  %v2572_v52 = vcombine.low %v3414_v25, %v3420_v27 }
  0xa4   : > { %603 = vmatpush1.bf16.msra.mxu0 %v2562_v62  ;;  %v2575_v62 = vcombine.high %v3423_v28, %v3429_v30 }
  0xa5   : > { %676 = vmatpush1.bf16.msra.mxu1 %v2564_v63  ;;  %604 = vmatprep.subr.bf16.mxu0 %v2567_v56  ;;  %v2577_v63 = vcombine.high %v3426_v29, %v3432_v31  ;;  %v2574_v56 = vcombine.low %v3423_v28, %v3429_v30 }
  0xa6   : > { %677 = vmatprep.subr.bf16.mxu1 %v2569_v57  ;;  %v2576_v57 = vcombine.low %v3426_v29, %v3432_v31 }
  0xa8   : > { %605 = vmatpush1.bf16.msra.mxu0 %v2566_v60  ;;  %v2805_v60 = vld [vmem:[#allocation4] sm:$0xff]  }
  0xa9   : > { %678 = vmatpush1.bf16.msra.mxu1 %v2568_v61  ;;  %606 = vmatprep.subr.bf16.mxu0 %v2571_v59  ;;  %v2806_v61 = vld [vmem:[#allocation4 + $0x8] sm:$0xff]   ;;  %v2807_v59 = vld [vmem:[#allocation4 + $0x10] sm:$0xff]  }
  0xaa   : > { %679 = vmatprep.subr.bf16.mxu1 %v2573_v58  ;;  %v2808_v58 = vld [vmem:[#allocation4 + $0x18] sm:$0xff]  }
  0xac   : > { %607 = vmatpush1.bf16.msra.mxu0 %v2570_v55  ;;  %v390_v55 = vlaneseq }
  0xad   : > { %680 = vmatpush1.bf16.msra.mxu1 %v2572_v52  ;;  %608 = vmatprep.subr.bf16.mxu0 %v2575_v62 }
  0xae   : > { %681 = vmatprep.subr.bf16.mxu1 %v2577_v63  ;;  %v391_v52 = vshrl.u32 %v390_v55, 7 }
  0xb0   : > { %609 = vmatpush1.bf16.msra.mxu0 %v2574_v56  ;;  %v392_v62 = vsub.s32 0, %v391_v52  ;;  %v400_v63 = vsub.s32 2, %v391_v52  ;;  %v396_v56 = vsub.s32 1, %v391_v52 }
  0xb1   : > { %682 = vmatpush1.bf16.msra.mxu1 %v2576_v57  ;;  %v404_v57 = vsub.s32 3, %v391_v52 }
  0xb3   : > { %627 = vmatmul.mubr.bf16.vlgmr.msra.gmra.mrb[0].mxu0 %v2805_v60 }
  0xb4   : > { %700 = vmatmul.mubr.bf16.vlgmr.msra.gmra.mrb[0].mxu1 %v2805_v60  ;;  %636 = vmatprep.mubr.bf16.mxu0 %v3135_v54  ;;  %v3614_v60 = vrot.slane %v3538_v53, %v392_v62 }
  0xb5   : > { %709 = vmatprep.mubr.bf16.mxu1 %v3135_v54 }
  0xbb   : > { %637 = vmatmul.mubr.bf16.gmra.mrb[4].mxu0 %v2806_v61 }
  0xbc   : > { %710 = vmatmul.mubr.bf16.gmra.mrb[4].mxu1 %v2806_v61  ;;  %646 = vmatprep.mubr.bf16.mxu0 %v3135_v54  ;;  %v3617_v61 = vrot.slane %v3538_v53, %v400_v63 }
  0xbd   : > { %719 = vmatprep.mubr.bf16.mxu1 %v3135_v54 }
  0xc3   : > { %647 = vmatmul.mubr.bf16.gmra.mrb[8].mxu0 %v2807_v59 }
  0xc4   : > { %720 = vmatmul.mubr.bf16.gmra.mrb[8].mxu1 %v2807_v59  ;;  %656 = vmatprep.mubr.bf16.mxu0 %v3135_v54  ;;  %v3620_v59 = vrot.slane %v3538_v53, %v396_v56 }
  0xc5   : > { %729 = vmatprep.mubr.bf16.mxu1 %v3135_v54  ;;  %v3623_v54 = vrot.slane %v3538_v53, %v404_v57 }
  0xcb   : > { %657 = vmatmul.mubr.bf16.gmra.mrb[12].mxu0 %v2808_v58 }
  0xcc   : > { %730 = vmatmul.mubr.bf16.gmra.mrb[12].mxu1 %v2808_v58 }
 0x186   : > { %v628_v49 = vpop.f32.mrb[0].mxu0 }
 0x187   : > { %v701_v58 = vpop.f32.mrb[0].mxu1  ;;  %v629_v55 = vadd.f32 %v628_v49, %v3614_v60  ;;  %v630_v48 = vpop.f32.mrb[1].mxu0 }
 0x188   : > { %v702_v51 = vadd.f32 %v701_v58, %v3617_v61  ;;  %v703_v52 = vpop.f32.mrb[1].mxu1  ;;  %v631_v62 = vadd.f32 %v630_v48, %v3620_v59  ;;  %v632_v63 = vpop.f32.mrb[2].mxu0 }
 0x189   : > { %v704_v50 = vadd.f32 %v703_v52, %v3623_v54  ;;  %v705_v45 = vpop.f32.mrb[2].mxu1  ;;  %740 = vst [vmem:[#allocation3] sm:$0xff] %v629_v55  ;;  %v633_v56 = vadd.f32 %v632_v63, %v3614_v60  ;;  %v634_v47 = vpop.f32.mrb[3].mxu0 }
 0x18a   : > { %742 = vst [vmem:[#allocation3 + $0x10] sm:$0xff] %v702_v51  ;;  %v706_v57 = vadd.f32 %v705_v45, %v3617_v61  ;;  %v707_v44 = vpop.f32.mrb[3].mxu1  ;;  %741 = vst [vmem:[#allocation3 + $0x8] sm:$0xff] %v631_v62  ;;  %v635_v49 = vadd.f32 %v634_v47, %v3620_v59 }
 0x18b   : > { %743 = vst [vmem:[#allocation3 + $0x18] sm:$0xff] %v704_v50  ;;  %v708_v58 = vadd.f32 %v707_v44, %v3623_v54  ;;  %744 = vst [vmem:[#allocation3 + $0x20] sm:$0xff] %v633_v56 }
 0x18c   : > { %746 = vst [vmem:[#allocation3 + $0x30] sm:$0xff] %v706_v57  ;;  %745 = vst [vmem:[#allocation3 + $0x28] sm:$0xff] %v635_v49 }
 0x18d   : > { %747 = vst [vmem:[#allocation3 + $0x38] sm:$0xff] %v708_v58 }
 0x18e   : > { %v638_v48 = vpop.f32.mrb[4].mxu0 }
 0x18f   : > { %v711_v52 = vpop.f32.mrb[4].mxu1  ;;  %v639_v51 = vadd.f32 %v638_v48, %v3614_v60  ;;  %v640_v63 = vpop.f32.mrb[5].mxu0 }
 0x190   : > { %v712_v55 = vadd.f32 %v711_v52, %v3617_v61  ;;  %v713_v45 = vpop.f32.mrb[5].mxu1  ;;  %v641_v46 = vadd.f32 %v640_v63, %v3620_v59  ;;  %v642_v62 = vpop.f32.mrb[6].mxu0 }
 0x191   : > { %v714_v50 = vadd.f32 %v713_v45, %v3623_v54  ;;  %v715_v47 = vpop.f32.mrb[6].mxu1  ;;  %748 = vst [vmem:[#allocation3 + $0x40] sm:$0xff] %v639_v51  ;;  %v643_v44 = vadd.f32 %v642_v62, %v3614_v60  ;;  %v644_v57 = vpop.f32.mrb[7].mxu0 }
 0x192   : > { %750 = vst [vmem:[#allocation3 + $0x50] sm:$0xff] %v712_v55  ;;  %v716_v56 = vadd.f32 %v715_v47, %v3617_v61  ;;  %v717_v49 = vpop.f32.mrb[7].mxu1  ;;  %749 = vst [vmem:[#allocation3 + $0x48] sm:$0xff] %v641_v46  ;;  %v645_v58 = vadd.f32 %v644_v57, %v3620_v59 }
 0x193   : > { %751 = vst [vmem:[#allocation3 + $0x58] sm:$0xff] %v714_v50  ;;  %v718_v48 = vadd.f32 %v717_v49, %v3623_v54  ;;  %752 = vst [vmem:[#allocation3 + $0x60] sm:$0xff] %v643_v44 }
 0x194   : > { %754 = vst [vmem:[#allocation3 + $0x70] sm:$0xff] %v716_v56  ;;  %753 = vst [vmem:[#allocation3 + $0x68] sm:$0xff] %v645_v58 }
 0x195   : > { %755 = vst [vmem:[#allocation3 + $0x78] sm:$0xff] %v718_v48 }
 0x196   : > { %v648_v52 = vpop.f32.mrb[8].mxu0 }
 0x197   : > { %v721_v63 = vpop.f32.mrb[8].mxu1  ;;  %v649_v51 = vadd.f32 %v648_v52, %v3614_v60  ;;  %v650_v45 = vpop.f32.mrb[9].mxu0 }
 0x198   : > { %v722_v55 = vadd.f32 %v721_v63, %v3617_v61  ;;  %v723_v62 = vpop.f32.mrb[9].mxu1  ;;  %v651_v47 = vadd.f32 %v650_v45, %v3620_v59  ;;  %v652_v50 = vpop.f32.mrb[10].mxu0 }
 0x199   : > { %v724_v46 = vadd.f32 %v723_v62, %v3623_v54  ;;  %v725_v57 = vpop.f32.mrb[10].mxu1  ;;  %756 = vst [vmem:[#allocation3 + $0x80] sm:$0xff] %v649_v51  ;;  %v653_v44 = vadd.f32 %v652_v50, %v3614_v60  ;;  %v654_v49 = vpop.f32.mrb[11].mxu0 }
 0x19a   : > { %758 = vst [vmem:[#allocation3 + $0x90] sm:$0xff] %v722_v55  ;;  %v726_v56 = vadd.f32 %v725_v57, %v3617_v61  ;;  %v727_v58 = vpop.f32.mrb[11].mxu1  ;;  %757 = vst [vmem:[#allocation3 + $0x88] sm:$0xff] %v651_v47  ;;  %v655_v48 = vadd.f32 %v654_v49, %v3620_v59 }
 0x19b   : > { %759 = vst [vmem:[#allocation3 + $0x98] sm:$0xff] %v724_v46  ;;  %v728_v52 = vadd.f32 %v727_v58, %v3623_v54  ;;  %760 = vst [vmem:[#allocation3 + $0xa0] sm:$0xff] %v653_v44 }
 0x19c   : > { %762 = vst [vmem:[#allocation3 + $0xb0] sm:$0xff] %v726_v56  ;;  %761 = vst [vmem:[#allocation3 + $0xa8] sm:$0xff] %v655_v48 }
 0x19d   : > { %763 = vst [vmem:[#allocation3 + $0xb8] sm:$0xff] %v728_v52 }
 0x19e   : > { %v658_v63 = vpop.f32.mrb[12].mxu0 }
 0x19f   : > { %v731_v45 = vpop.f32.mrb[12].mxu1  ;;  %v659_v51 = vadd.f32 %v658_v63, %v3614_v60  ;;  %v660_v62 = vpop.f32.mrb[13].mxu0 }
 0x1a0   : > { %v732_v55 = vadd.f32 %v731_v45, %v3617_v61  ;;  %v733_v50 = vpop.f32.mrb[13].mxu1  ;;  %v661_v57 = vadd.f32 %v660_v62, %v3620_v59  ;;  %v662_v46 = vpop.f32.mrb[14].mxu0 }
 0x1a1   : > { %v734_v47 = vadd.f32 %v733_v50, %v3623_v54  ;;  %v735_v49 = vpop.f32.mrb[14].mxu1  ;;  %764 = vst [vmem:[#allocation3 + $0xc0] sm:$0xff] %v659_v51  ;;  %v663_v44 = vadd.f32 %v662_v46, %v3614_v60  ;;  %v664_v58 = vpop.f32.mrb[15].mxu0 }
 0x1a2   : > { %766 = vst [vmem:[#allocation3 + $0xd0] sm:$0xff] %v732_v55  ;;  %v736_v56 = vadd.f32 %v735_v49, %v3617_v61  ;;  %v737_v48 = vpop.f32.mrb[15].mxu1  ;;  %765 = vst [vmem:[#allocation3 + $0xc8] sm:$0xff] %v661_v57  ;;  %v665_v52 = vadd.f32 %v664_v58, %v3620_v59 }
 0x1a3   : > { %767 = vst [vmem:[#allocation3 + $0xd8] sm:$0xff] %v734_v47  ;;  %v738_v63 = vadd.f32 %v737_v48, %v3623_v54  ;;  %768 = vst [vmem:[#allocation3 + $0xe0] sm:$0xff] %v663_v44 }
 0x1a4   : > { %770 = vst [vmem:[#allocation3 + $0xf0] sm:$0xff] %v736_v56  ;;  %769 = vst [vmem:[#allocation3 + $0xe8] sm:$0xff] %v665_v52 }
 0x1a5   : > { %771 = vst [vmem:[#allocation3 + $0xf8] sm:$0xff] %v738_v63 }
 0x1a6 PF: > { %p2578_p2 = scmp.le.s32.totalorder %s3117_s21, 0 }
 0x1a7   : > { %v2584_v60 = vcombine.high (!%p2578_p2), %v3339_v0, %v3345_v2  ;;  %v2586_v61 = vcombine.high (!%p2578_p2), %v3342_v1, %v3348_v3  ;;  %v2583_v45 = vcombine.low (!%p2578_p2), %v3339_v0, %v3345_v2  ;;  %v2585_v59 = vcombine.low (!%p2578_p2), %v3342_v1, %v3348_v3 }
 0x1a8   : > { %775 = sbr.rel (%p2578_p2) target bundleno = 699 (0x2bb), region = 68  ;;  %v2588_v54 = vcombine.high (!%p2578_p2), %v3351_v4, %v3357_v6  ;;  %v2590_v51 = vcombine.high (!%p2578_p2), %v3354_v5, %v3360_v7  ;;  %v2587_v55 = vcombine.low (!%p2578_p2), %v3351_v4, %v3357_v6  ;;  %v2589_v62 = vcombine.low (!%p2578_p2), %v3354_v5, %v3360_v7 }
 0x1a9   : > { %989 = vmatprep.subr.bf16.mxu0 (!%p2578_p2), %v2584_v60  ;;  %1062 = vmatprep.subr.bf16.mxu1 (!%p2578_p2), %v2586_v61  ;;  %v2592_v0 = vcombine.high (!%p2578_p2), %v3363_v8, %v3369_v10  ;;  %v2594_v1 = vcombine.high (!%p2578_p2), %v3366_v9, %v3372_v11  ;;  %v3136_v2 = vmov (!%p2578_p2), 0   ;;  %v2591_v3 = vcombine.low (!%p2578_p2), %v3363_v8, %v3369_v10 }
 0x1aa   : > { %990 = vmatpush1.bf16.msra.mxu0 (!%p2578_p2), %v2583_v45  ;;  %1063 = vmatpush1.bf16.msra.mxu1 (!%p2578_p2), %v2585_v59  ;;  %v2593_v4 = vcombine.low (!%p2578_p2), %v3366_v9, %v3372_v11  ;;  %v2596_v5 = vcombine.high (!%p2578_p2), %v3375_v12, %v3381_v14  ;;  %v2598_v6 = vcombine.high (!%p2578_p2), %v3378_v13, %v3384_v15 }
 0x1ab   : > { %991 = vmatprep.subr.bf16.mxu0 (!%p2578_p2), %v2588_v54  ;;  %1064 = vmatprep.subr.bf16.mxu1 (!%p2578_p2), %v2590_v51  ;;  %v2595_v7 = vcombine.low (!%p2578_p2), %v3375_v12, %v3381_v14  ;;  %v2597_v50 = vcombine.low (!%p2578_p2), %v3378_v13, %v3384_v15  ;;  %v2600_v8 = vcombine.high (!%p2578_p2), %v3387_v16, %v3393_v18 }
 0x1ac   : > { %1021 = vmatprep.mubr.bf16.mxu0 (!%p2578_p2), %v3136_v2  ;;  %1094 = vmatprep.mubr.bf16.mxu1 (!%p2578_p2), %v3136_v2  ;;  %v2602_v9 = vcombine.high (!%p2578_p2), %v3390_v17, %v3396_v19  ;;  %v2599_v10 = vcombine.low (!%p2578_p2), %v3387_v16, %v3393_v18  ;;  %v2601_v11 = vcombine.low (!%p2578_p2), %v3390_v17, %v3396_v19 }
 0x1ad   : > { %v2604_v12 = vcombine.high (!%p2578_p2), %v3399_v20, %v3405_v22  ;;  %v2606_v13 = vcombine.high (!%p2578_p2), %v3402_v21, %v3408_v23  ;;  %v2603_v14 = vcombine.low (!%p2578_p2), %v3399_v20, %v3405_v22  ;;  %v2605_v15 = vcombine.low (!%p2578_p2), %v3402_v21, %v3408_v23 }
 0x1ae   : > { %992 = vmatpush1.bf16.msra.mxu0 (!%p2578_p2), %v2587_v55  ;;  %1065 = vmatpush1.bf16.msra.mxu1 (!%p2578_p2), %v2589_v62  ;;  %v2608_v16 = vcombine.high (!%p2578_p2), %v3411_v24, %v3417_v26  ;;  %v2610_v17 = vcombine.high (!%p2578_p2), %v3414_v25, %v3420_v27  ;;  %v2607_v18 = vcombine.low (!%p2578_p2), %v3411_v24, %v3417_v26  ;;  %v2809_v24 = vld [vmem:[#allocation2] sm:$0xff] (!%p2578_p2)   ;;  %v2811_v26 = vld [vmem:[#allocation2 + $0x10] sm:$0xff] (!%p2578_p2)  }
 0x1af   : > { %993 = vmatprep.subr.bf16.mxu0 %v2592_v0  ;;  %1066 = vmatprep.subr.bf16.mxu1 %v2594_v1  ;;  %v2609_v19 = vcombine.low %v3414_v25, %v3420_v27  ;;  %v2612_v20 = vcombine.high %v3423_v28, %v3429_v30  ;;  %v2614_v21 = vcombine.high %v3426_v29, %v3432_v31  ;;  %v2810_v25 = vld [vmem:[#allocation2 + $0x8] sm:$0xff]   ;;  %v2812_v27 = vld [vmem:[#allocation2 + $0x18] sm:$0xff]  }
 0x1b0   : > { %v2611_v22 = vcombine.low %v3423_v28, %v3429_v30  ;;  %v2613_v23 = vcombine.low %v3426_v29, %v3432_v31  ;;  %v785_v28 = vlaneseq }
 0x1b2   : > { %994 = vmatpush1.bf16.msra.mxu0 %v2591_v3  ;;  %1067 = vmatpush1.bf16.msra.mxu1 %v2593_v4  ;;  %v786_v29 = vshrl.u32 %v785_v28, 7 }
 0x1b3   : > { %995 = vmatprep.subr.bf16.mxu0 %v2596_v5  ;;  %1068 = vmatprep.subr.bf16.mxu1 %v2598_v6 }
 0x1b4   : > { %v787_v30 = vsub.s32 0, %v786_v29  ;;  %v795_v31 = vsub.s32 2, %v786_v29  ;;  %v791_v57 = vsub.s32 1, %v786_v29  ;;  %v799_v47 = vsub.s32 3, %v786_v29 }
 0x1b6   : > { %996 = vmatpush1.bf16.msra.mxu0 %v2595_v7  ;;  %1069 = vmatpush1.bf16.msra.mxu1 %v2597_v50  ;;  %v3731_v46 = vrot.slane %v3538_v53, %v787_v30  ;;  %v3734_v49 = vrot.slane %v3538_v53, %v795_v31  ;;  %v3737_v44 = vrot.slane %v3538_v53, %v791_v57 }
 0x1b7   : > { %997 = vmatprep.subr.bf16.mxu0 %v2600_v8  ;;  %1070 = vmatprep.subr.bf16.mxu1 %v2602_v9  ;;  %v3740_v56 = vrot.slane %v3538_v53, %v799_v47 }
 0x1ba   : > { %998 = vmatpush1.bf16.msra.mxu0 %v2599_v10  ;;  %1071 = vmatpush1.bf16.msra.mxu1 %v2601_v11 }
 0x1bb   : > { %999 = vmatprep.subr.bf16.mxu0 %v2604_v12  ;;  %1072 = vmatprep.subr.bf16.mxu1 %v2606_v13 }
 0x1be   : > { %1000 = vmatpush1.bf16.msra.mxu0 %v2603_v14  ;;  %1073 = vmatpush1.bf16.msra.mxu1 %v2605_v15 }
 0x1bf   : > { %1001 = vmatprep.subr.bf16.mxu0 %v2608_v16  ;;  %1074 = vmatprep.subr.bf16.mxu1 %v2610_v17 }
 0x1c2   : > { %1002 = vmatpush1.bf16.msra.mxu0 %v2607_v18  ;;  %1075 = vmatpush1.bf16.msra.mxu1 %v2609_v19 }
 0x1c3   : > { %1003 = vmatprep.subr.bf16.mxu0 %v2612_v20  ;;  %1076 = vmatprep.subr.bf16.mxu1 %v2614_v21 }
 0x1c6   : > { %1004 = vmatpush1.bf16.msra.mxu0 %v2611_v22  ;;  %1077 = vmatpush1.bf16.msra.mxu1 %v2613_v23 }
 0x1c9   : > { %1022 = vmatmul.mubr.bf16.vlgmr.msra.gmra.mrb[0].mxu0 %v2809_v24  ;;  %1095 = vmatmul.mubr.bf16.vlgmr.msra.gmra.mrb[0].mxu1 %v2809_v24 }
 0x1ca   : > { %1031 = vmatprep.mubr.bf16.mxu0 %v3136_v2  ;;  %1104 = vmatprep.mubr.bf16.mxu1 %v3136_v2 }
 0x1d1   : > { %1032 = vmatmul.mubr.bf16.gmra.mrb[4].mxu0 %v2810_v25  ;;  %1105 = vmatmul.mubr.bf16.gmra.mrb[4].mxu1 %v2810_v25 }
 0x1d2   : > { %1041 = vmatprep.mubr.bf16.mxu0 %v3136_v2  ;;  %1114 = vmatprep.mubr.bf16.mxu1 %v3136_v2 }
 0x1d9   : > { %1042 = vmatmul.mubr.bf16.gmra.mrb[8].mxu0 %v2811_v26  ;;  %1115 = vmatmul.mubr.bf16.gmra.mrb[8].mxu1 %v2811_v26 }
 0x1da   : > { %1051 = vmatprep.mubr.bf16.mxu0 %v3136_v2  ;;  %1124 = vmatprep.mubr.bf16.mxu1 %v3136_v2 }
 0x1e1   : > { %1052 = vmatmul.mubr.bf16.gmra.mrb[12].mxu0 %v2812_v27  ;;  %1125 = vmatmul.mubr.bf16.gmra.mrb[12].mxu1 %v2812_v27 }
 0x29c   : > { %v1023_v58 = vpop.f32.mrb[0].mxu0  ;;  %v1096_v48 = vpop.f32.mrb[0].mxu1 }
 0x29d   : > { %v1024_v52 = vadd.f32 %v1023_v58, %v3731_v46  ;;  %v1097_v63 = vadd.f32 %v1096_v48, %v3734_v49  ;;  %v1025_v60 = vpop.f32.mrb[1].mxu0  ;;  %v1098_v61 = vpop.f32.mrb[1].mxu1 }
 0x29e   : > { %v1026_v45 = vadd.f32 %v1025_v60, %v3737_v44  ;;  %v1099_v59 = vadd.f32 %v1098_v61, %v3740_v56  ;;  %v1027_v54 = vpop.f32.mrb[2].mxu0  ;;  %v1100_v51 = vpop.f32.mrb[2].mxu1 }
 0x29f   : > { %1135 = vst [vmem:[#allocation3] sm:$0xff] %v1024_v52  ;;  %1137 = vst [vmem:[#allocation3 + $0x10] sm:$0xff] %v1097_v63  ;;  %v1028_v55 = vadd.f32 %v1027_v54, %v3731_v46  ;;  %v1101_v53 = vadd.f32 %v1100_v51, %v3734_v49  ;;  %v1029_v62 = vpop.f32.mrb[3].mxu0  ;;  %v1102_v0 = vpop.f32.mrb[3].mxu1 }
 0x2a0   : > { %1136 = vst [vmem:[#allocation3 + $0x8] sm:$0xff] %v1026_v45  ;;  %1138 = vst [vmem:[#allocation3 + $0x18] sm:$0xff] %v1099_v59  ;;  %v1030_v1 = vadd.f32 %v1029_v62, %v3737_v44  ;;  %v1103_v2 = vadd.f32 %v1102_v0, %v3740_v56 }
 0x2a1   : > { %1139 = vst [vmem:[#allocation3 + $0x20] sm:$0xff] %v1028_v55  ;;  %1141 = vst [vmem:[#allocation3 + $0x30] sm:$0xff] %v1101_v53 }
 0x2a2   : > { %1140 = vst [vmem:[#allocation3 + $0x28] sm:$0xff] %v1030_v1  ;;  %1142 = vst [vmem:[#allocation3 + $0x38] sm:$0xff] %v1103_v2 }
 0x2a4   : > { %v1033_v3 = vpop.f32.mrb[4].mxu0  ;;  %v1106_v4 = vpop.f32.mrb[4].mxu1 }
 0x2a5   : > { %v1034_v5 = vadd.f32 %v1033_v3, %v3731_v46  ;;  %v1107_v6 = vadd.f32 %v1106_v4, %v3734_v49  ;;  %v1035_v7 = vpop.f32.mrb[5].mxu0  ;;  %v1108_v50 = vpop.f32.mrb[5].mxu1 }
 0x2a6   : > { %v1036_v8 = vadd.f32 %v1035_v7, %v3737_v44  ;;  %v1109_v9 = vadd.f32 %v1108_v50, %v3740_v56  ;;  %v1037_v10 = vpop.f32.mrb[6].mxu0  ;;  %v1110_v11 = vpop.f32.mrb[6].mxu1 }
 0x2a7   : > { %1143 = vst [vmem:[#allocation3 + $0x40] sm:$0xff] %v1034_v5  ;;  %1145 = vst [vmem:[#allocation3 + $0x50] sm:$0xff] %v1107_v6  ;;  %v1038_v12 = vadd.f32 %v1037_v10, %v3731_v46  ;;  %v1111_v13 = vadd.f32 %v1110_v11, %v3734_v49  ;;  %v1039_v14 = vpop.f32.mrb[7].mxu0  ;;  %v1112_v15 = vpop.f32.mrb[7].mxu1 }
 0x2a8   : > { %1144 = vst [vmem:[#allocation3 + $0x48] sm:$0xff] %v1036_v8  ;;  %1146 = vst [vmem:[#allocation3 + $0x58] sm:$0xff] %v1109_v9  ;;  %v1040_v16 = vadd.f32 %v1039_v14, %v3737_v44  ;;  %v1113_v17 = vadd.f32 %v1112_v15, %v3740_v56 }
 0x2a9   : > { %1147 = vst [vmem:[#allocation3 + $0x60] sm:$0xff] %v1038_v12  ;;  %1149 = vst [vmem:[#allocation3 + $0x70] sm:$0xff] %v1111_v13 }
 0x2aa   : > { %1148 = vst [vmem:[#allocation3 + $0x68] sm:$0xff] %v1040_v16  ;;  %1150 = vst [vmem:[#allocation3 + $0x78] sm:$0xff] %v1113_v17 }
 0x2ac   : > { %v1043_v18 = vpop.f32.mrb[8].mxu0  ;;  %v1116_v19 = vpop.f32.mrb[8].mxu1 }
 0x2ad   : > { %v1044_v20 = vadd.f32 %v1043_v18, %v3731_v46  ;;  %v1117_v21 = vadd.f32 %v1116_v19, %v3734_v49  ;;  %v1045_v22 = vpop.f32.mrb[9].mxu0  ;;  %v1118_v23 = vpop.f32.mrb[9].mxu1 }
 0x2ae   : > { %v1046_v24 = vadd.f32 %v1045_v22, %v3737_v44  ;;  %v1119_v25 = vadd.f32 %v1118_v23, %v3740_v56  ;;  %v1047_v26 = vpop.f32.mrb[10].mxu0  ;;  %v1120_v27 = vpop.f32.mrb[10].mxu1 }
 0x2af   : > { %1151 = vst [vmem:[#allocation3 + $0x80] sm:$0xff] %v1044_v20  ;;  %1153 = vst [vmem:[#allocation3 + $0x90] sm:$0xff] %v1117_v21  ;;  %v1048_v28 = vadd.f32 %v1047_v26, %v3731_v46  ;;  %v1121_v29 = vadd.f32 %v1120_v27, %v3734_v49  ;;  %v1049_v30 = vpop.f32.mrb[11].mxu0  ;;  %v1122_v31 = vpop.f32.mrb[11].mxu1 }
 0x2b0   : > { %1152 = vst [vmem:[#allocation3 + $0x88] sm:$0xff] %v1046_v24  ;;  %1154 = vst [vmem:[#allocation3 + $0x98] sm:$0xff] %v1119_v25  ;;  %v1050_v57 = vadd.f32 %v1049_v30, %v3737_v44  ;;  %v1123_v47 = vadd.f32 %v1122_v31, %v3740_v56 }
 0x2b1   : > { %1155 = vst [vmem:[#allocation3 + $0xa0] sm:$0xff] %v1048_v28  ;;  %1157 = vst [vmem:[#allocation3 + $0xb0] sm:$0xff] %v1121_v29 }
 0x2b2   : > { %1156 = vst [vmem:[#allocation3 + $0xa8] sm:$0xff] %v1050_v57  ;;  %1158 = vst [vmem:[#allocation3 + $0xb8] sm:$0xff] %v1123_v47 }
 0x2b4   : > { %v1053_v58 = vpop.f32.mrb[12].mxu0  ;;  %v1126_v48 = vpop.f32.mrb[12].mxu1 }
 0x2b5   : > { %v1054_v52 = vadd.f32 %v1053_v58, %v3731_v46  ;;  %v1127_v63 = vadd.f32 %v1126_v48, %v3734_v49  ;;  %v1055_v60 = vpop.f32.mrb[13].mxu0  ;;  %v1128_v61 = vpop.f32.mrb[13].mxu1 }
 0x2b6   : > { %v1056_v45 = vadd.f32 %v1055_v60, %v3737_v44  ;;  %v1129_v59 = vadd.f32 %v1128_v61, %v3740_v56  ;;  %v1057_v54 = vpop.f32.mrb[14].mxu0  ;;  %v1130_v51 = vpop.f32.mrb[14].mxu1 }
 0x2b7   : > { %1159 = vst [vmem:[#allocation3 + $0xc0] sm:$0xff] %v1054_v52  ;;  %1161 = vst [vmem:[#allocation3 + $0xd0] sm:$0xff] %v1127_v63  ;;  %v1058_v55 = vadd.f32 %v1057_v54, %v3731_v46  ;;  %v1131_v53 = vadd.f32 %v1130_v51, %v3734_v49  ;;  %v1059_v62 = vpop.f32.mrb[15].mxu0  ;;  %v1132_v0 = vpop.f32.mrb[15].mxu1 }
 0x2b8   : > { %1160 = vst [vmem:[#allocation3 + $0xc8] sm:$0xff] %v1056_v45  ;;  %1162 = vst [vmem:[#allocation3 + $0xd8] sm:$0xff] %v1129_v59  ;;  %v1060_v1 = vadd.f32 %v1059_v62, %v3737_v44  ;;  %v1133_v2 = vadd.f32 %v1132_v0, %v3740_v56 }
 0x2b9   : > { %1163 = vst [vmem:[#allocation3 + $0xe0] sm:$0xff] %v1058_v55  ;;  %1165 = vst [vmem:[#allocation3 + $0xf0] sm:$0xff] %v1131_v53 }
 0x2ba   : > { %1164 = vst [vmem:[#allocation3 + $0xe8] sm:$0xff] %v1060_v1  ;;  %1166 = vst [vmem:[#allocation3 + $0xf8] sm:$0xff] %v1133_v2 }
 0x2bb PF: > { %v3776_v3 = vcombine.high %v3439_v32, %v3445_v34  ;;  %v3780_v46 = vcombine.low %v3439_v32, %v3445_v34  ;;  %v3784_v49 = vcombine.high %v3451_v36, %v3457_v38  ;;  %v3788_v44 = vcombine.high %v3442_v33, %v3448_v35  ;;  %v4329_v5 = vld [vmem:[#allocation19_spill] sm:$0xff]  ;;  %v4331_v7 = vld [vmem:[#allocation20_spill] sm:$0xff]  ;;  %v4332_v50 = vld [vmem:[#allocation18_spill] sm:$0xff]  ;;  %p3943_p10 = scmp.ge.s32.totalorder %s376_s29, 2 }
 0x2bc   : > { %v3793_v56 = vcombine.low %v3442_v33, %v3448_v35  ;;  %v3797_v4 = vcombine.high %v3454_v37, %v3460_v39  ;;  %v3802_v32 = vcombine.low %v3451_v36, %v3457_v38  ;;  %v3808_v34 = vcombine.high %v3463_v40, %v3469_v42  ;;  %v4334_v9 = vld [vmem:[#allocation21_spill] sm:$0xff]  ;;  %v4335_v10 = vld [vmem:[#allocation24_spill] sm:$0xff]  ;;  %v4336_v11 = vld [vmem:[#allocation22_spill] sm:$0xff] }
 0x2bd   : > { %1331 = vmatprep.subr.bf16.mxu0 %v3776_v3  ;;  %1372 = vmatprep.subr.bf16.mxu1 %v3788_v44  ;;  %v3813_v33 = vcombine.low %v3454_v37, %v3460_v39  ;;  %v3818_v35 = vcombine.high %v3466_v41, %v3472_v43  ;;  %v3137_v36 = vmov 0   ;;  %v3824_v38 = vcombine.low %v3463_v40, %v3469_v42  ;;  %v4330_v37 = vld [vmem:[#allocation17_spill] sm:$0xff]  ;;  %v4333_v42 = vld [vmem:[#allocation23_spill] sm:$0xff]  ;;  %v4339_v18 = vld [vmem:[#allocation28_spill] sm:$0xff] }
 0x2be   : > { %1332 = vmatpush1.bf16.msra.mxu0 %v3780_v46  ;;  %1373 = vmatpush1.bf16.msra.mxu1 %v3793_v56  ;;  %v3829_v39 = vcombine.high %v4330_v37, %v4329_v5  ;;  %v3834_v6 = vcombine.low %v3466_v41, %v3472_v43  ;;  %v3839_v8 = vcombine.high %v4332_v50, %v4331_v7  ;;  %v4337_v14 = vld [vmem:[#allocation27_spill] sm:$0xff]  ;;  %v4338_v15 = vld [vmem:[#allocation25_spill] sm:$0xff]  ;;  %v4340_v19 = vld [vmem:[#allocation26_spill] sm:$0xff] }
 0x2bf   : > { %1333 = vmatprep.subr.bf16.mxu0 %v3784_v49  ;;  %1374 = vmatprep.subr.bf16.mxu1 %v3797_v4  ;;  %v3845_v40 = vcombine.low %v4330_v37, %v4329_v5  ;;  %v3850_v41 = vcombine.high %v4334_v9, %v4333_v42  ;;  %v3855_v43 = vcombine.low %v4332_v50, %v4331_v7  ;;  %v4341_v22 = vld [vmem:[#allocation31_spill] sm:$0xff]  ;;  %v4342_v23 = vld [vmem:[#allocation29_spill] sm:$0xff]  ;;  %v4343_v26 = vld [vmem:[#allocation32_spill] sm:$0xff] }
 0x2c0   : > { %1363 = vmatprep.mubr.bf16.mxu0 %v3137_v36  ;;  %1404 = vmatprep.mubr.bf16.mxu1 %v3137_v36  ;;  %v3860_v12 = vcombine.high %v4336_v11, %v4335_v10  ;;  %v3865_v13 = vcombine.low %v4334_v9, %v4333_v42  ;;  %v3870_v16 = vcombine.high %v4338_v15, %v4337_v14  ;;  %v4344_v27 = vld [vmem:[#allocation30_spill] sm:$0xff]  ;;  %v4345_v30 = vld [vmem:[#allocation35_spill] sm:$0xff]  ;;  %v4346_v31 = vld [vmem:[#allocation33_spill] sm:$0xff] }
 0x2c1   : > { %v3875_v17 = vcombine.low %v4336_v11, %v4335_v10  ;;  %v3880_v20 = vcombine.high %v4340_v19, %v4339_v18  ;;  %v3885_v21 = vcombine.low %v4338_v15, %v4337_v14  ;;  %v3890_v24 = vcombine.high %v4342_v23, %v4341_v22  ;;  %v4347_v58 = vld [vmem:[#allocation36_spill] sm:$0xff]  ;;  %v4348_v48 = vld [vmem:[#allocation34_spill] sm:$0xff]  ;;  %v1168_v45 = vld [vmem:[#allocation3 + $0x8] sm:$0xff] }
 0x2c2   : > { %1334 = vmatpush1.bf16.msra.mxu0 %v3802_v32  ;;  %1375 = vmatpush1.bf16.msra.mxu1 %v3813_v33  ;;  %v3895_v25 = vcombine.low %v4340_v19, %v4339_v18  ;;  %v3900_v28 = vcombine.high %v4344_v27, %v4343_v26  ;;  %v3905_v29 = vcombine.low %v4342_v23, %v4341_v22  ;;  %v1167_v61 = vld [vmem:[#allocation3] sm:$0xff]  ;;  %v1169_v7 = vld [vmem:[#allocation3 + $0x10] sm:$0xff]  ;;  %v1170_v9 = vld [vmem:[#allocation3 + $0x18] sm:$0xff] }
 0x2c3   : > { %1335 = vmatprep.subr.bf16.mxu0 %v3808_v34  ;;  %1376 = vmatprep.subr.bf16.mxu1 %v3818_v35  ;;  %v3910_v57 = vcombine.high %v4346_v31, %v4345_v30  ;;  %v3915_v47 = vcombine.low %v4344_v27, %v4343_v26  ;;  %v3920_v52 = vcombine.high %v4348_v48, %v4347_v58 }
 0x2c4   : > { %v3925_v63 = vcombine.low %v4346_v31, %v4345_v30  ;;  %v3931_v60 = vcombine.low %v4348_v48, %v4347_v58 }
 0x2c6   : > { %1336 = vmatpush1.bf16.msra.mxu0 %v3824_v38  ;;  %1377 = vmatpush1.bf16.msra.mxu1 %v3834_v6 }
 0x2c7   : > { %1337 = vmatprep.subr.bf16.mxu0 %v3829_v39  ;;  %1378 = vmatprep.subr.bf16.mxu1 %v3839_v8 }
 0x2ca   : > { %1338 = vmatpush1.bf16.msra.mxu0 %v3845_v40  ;;  %1379 = vmatpush1.bf16.msra.mxu1 %v3855_v43 }
 0x2cb   : > { %1339 = vmatprep.subr.bf16.mxu0 %v3850_v41  ;;  %1380 = vmatprep.subr.bf16.mxu1 %v3860_v12 }
 0x2ce   : > { %1340 = vmatpush1.bf16.msra.mxu0 %v3865_v13  ;;  %1381 = vmatpush1.bf16.msra.mxu1 %v3875_v17 }
 0x2cf   : > { %1341 = vmatprep.subr.bf16.mxu0 %v3870_v16  ;;  %1382 = vmatprep.subr.bf16.mxu1 %v3880_v20 }
 0x2d2   : > { %1342 = vmatpush1.bf16.msra.mxu0 %v3885_v21  ;;  %1383 = vmatpush1.bf16.msra.mxu1 %v3895_v25 }
 0x2d3   : > { %1343 = vmatprep.subr.bf16.mxu0 %v3890_v24  ;;  %1384 = vmatprep.subr.bf16.mxu1 %v3900_v28 }
 0x2d6   : > { %1344 = vmatpush1.bf16.msra.mxu0 %v3905_v29  ;;  %1385 = vmatpush1.bf16.msra.mxu1 %v3915_v47 }
 0x2d7   : > { %1345 = vmatprep.subr.bf16.mxu0 %v3910_v57  ;;  %1386 = vmatprep.subr.bf16.mxu1 %v3920_v52 }
 0x2da   : > { %1346 = vmatpush1.bf16.msra.mxu0 %v3925_v63  ;;  %1387 = vmatpush1.bf16.msra.mxu1 %v3931_v60 }
 0x2dd   : > { %1364 = vmatmul.mubr.bf16.vlgmr.msra.gmra.mrb[0].mxu0 %v3137_v36  ;;  %1405 = vmatmul.mubr.bf16.vlgmr.msra.gmra.mrb[0].mxu1 %v3137_v36 }
 0x3b0   : > { %v1365_v59 = vpop.f32.mrb[0].mxu0  ;;  %v1406_v55 = vpop.f32.mrb[0].mxu1 }
 0x3b1   : > { %v1413_v54 = vadd.f32 %v1365_v59, %v1167_v61  ;;  %v1367_v51 = vpop.f32.mrb[1].mxu0  ;;  %v1408_v0 = vpop.f32.mrb[1].mxu1  ;;  %v1415_v42 = vadd.f32 %v1406_v55, %v1169_v7 }
 0x3b2   : > { %v1414_v53 = vadd.f32 %v1367_v51, %v1168_v45  ;;  %v1369_v62 = vpop.f32.mrb[2].mxu0  ;;  %v1410_v5 = vpop.f32.mrb[2].mxu1  ;;  %v1416_v11 = vadd.f32 %v1408_v0, %v1170_v9 }
 0x3b3   : > { %v2647_v1 = vmul.f32 -1.442695, %v1413_v54  ;;  %v1370_v2 = vpop.f32.mrb[3].mxu0  ;;  %v1411_v50 = vpop.f32.mrb[3].mxu1  ;;  %v2649_v10 = vmul.f32 -1.442695, %v1415_v42 }
 0x3b4   : > { %v2648_v37 = vmul.f32 -1.442695, %v1414_v53 }
 0x3b5   : > { %2813 = vpow2.f32 %v2647_v1 }
 0x3b6   : > { %2815 = vpow2.f32 %v2648_v37 }
 0x3b7   : > { %2817 = vpow2.f32 %v2649_v10 }
 0x3b8   : > { %2819 = vtanh.f32 %v1416_v11 }
 0x3bf   : > { %v2814_v14 = vpop.eup %2813 }
 0x3c0   : > { %v2816_v15 = vpop.eup %2815  ;;  %v1426_v18 = vadd.f32 1.0, %v2814_v14 }
 0x3c1   : > { %v1427_v19 = vadd.f32 1.0, %v2816_v15  ;;  %v2818_v22 = vpop.eup %2817 }
 0x3c2   : > { %2821 = vrcp.f32 %v1426_v18  ;;  %v2820_v23 = vpop.eup %2819  ;;  %v1428_v27 = vadd.f32 1.0, %v2818_v22 }
 0x3c3   : > { %2823 = vrcp.f32 %v1427_v19 }
 0x3c4   : > { %2825 = vrcp.f32 %v1428_v27 }
 0x3cc   : > { %v2822_v26 = vpop.eup %2821 }
 0x3cd   : > { %v2824_v30 = vpop.eup %2823  ;;  %v1437_v31 = vmul.f32 %v2822_v26, %v2820_v23 }
 0x3ce   : > { %v1436_v58 = vmul.f32 0.0, %v2824_v30  ;;  %v2826_v61 = vpop.eup %2825 }
 0x3d0   : > { %v3938_v48 = vadd.f32 %v1437_v31, %v1436_v58 }
 0x3d2   : > { %2827 = vtanh.f32 %v3938_v48 }
 0x3d9   : > { %1444 = sbr.rel (%p3943_p10) target bundleno = 994 (0x3e2), region = 72 }
 0x3dc   : > { %v2828_v45 = vpop.eup %2827 }
 0x3dd   : > { %v1440_v59 = vmul.f32 %v2828_v45, %v2826_v61 }
 0x3df   : > { %v1441_v54 = vpack.c.bf16 %v1440_v59, %v1440_v59 }
 0x3e1   : > { %1445 = vst [vmem:[#allocation2] sm:$0xf] %v1441_v54 }
 0x3e2 PF: > { %1451 = vmatprep.subr.bf16.mxu0 %v3776_v3  ;;  %1492 = vmatprep.subr.bf16.mxu1 %v3788_v44  ;;  %v1447_v51 = vld [vmem:[#allocation3 + $0x20] sm:$0xff]  ;;  %v1448_v55 = vld [vmem:[#allocation3 + $0x28] sm:$0xff]  ;;  %v1449_v11 = vld [vmem:[#allocation3 + $0x30] sm:$0xff] }
 0x3e3   : > { %1452 = vmatpush1.bf16.msra.mxu0 %v3780_v46  ;;  %1493 = vmatpush1.bf16.msra.mxu1 %v3793_v56  ;;  %v1450_v15 = vld [vmem:[#allocation3 + $0x38] sm:$0xff] }
 0x3e4   : > { %1453 = vmatprep.subr.bf16.mxu0 %v3784_v49  ;;  %1494 = vmatprep.subr.bf16.mxu1 %v3797_v4 }
 0x3e5   : > { %1483 = vmatprep.mubr.bf16.mxu0 %v3137_v36  ;;  %1524 = vmatprep.mubr.bf16.mxu1 %v3137_v36 }
 0x3e7   : > { %1454 = vmatpush1.bf16.msra.mxu0 %v3802_v32  ;;  %1495 = vmatpush1.bf16.msra.mxu1 %v3813_v33 }
 0x3e8   : > { %1455 = vmatprep.subr.bf16.mxu0 %v3808_v34  ;;  %1496 = vmatprep.subr.bf16.mxu1 %v3818_v35 }
 0x3eb   : > { %1456 = vmatpush1.bf16.msra.mxu0 %v3824_v38  ;;  %1497 = vmatpush1.bf16.msra.mxu1 %v3834_v6 }
 0x3ec   : > { %1457 = vmatprep.subr.bf16.mxu0 %v3829_v39  ;;  %1498 = vmatprep.subr.bf16.mxu1 %v3839_v8 }
 0x3ef   : > { %1458 = vmatpush1.bf16.msra.mxu0 %v3845_v40  ;;  %1499 = vmatpush1.bf16.msra.mxu1 %v3855_v43 }
 0x3f0   : > { %1459 = vmatprep.subr.bf16.mxu0 %v3850_v41  ;;  %1500 = vmatprep.subr.bf16.mxu1 %v3860_v12 }
 0x3f3   : > { %1460 = vmatpush1.bf16.msra.mxu0 %v3865_v13  ;;  %1501 = vmatpush1.bf16.msra.mxu1 %v3875_v17 }
 0x3f4   : > { %1461 = vmatprep.subr.bf16.mxu0 %v3870_v16  ;;  %1502 = vmatprep.subr.bf16.mxu1 %v3880_v20 }
 0x3f7   : > { %1462 = vmatpush1.bf16.msra.mxu0 %v3885_v21  ;;  %1503 = vmatpush1.bf16.msra.mxu1 %v3895_v25 }
 0x3f8   : > { %1463 = vmatprep.subr.bf16.mxu0 %v3890_v24  ;;  %1504 = vmatprep.subr.bf16.mxu1 %v3900_v28 }
 0x3fb   : > { %1464 = vmatpush1.bf16.msra.mxu0 %v3905_v29  ;;  %1505 = vmatpush1.bf16.msra.mxu1 %v3915_v47 }
 0x3fc   : > { %1465 = vmatprep.subr.bf16.mxu0 %v3910_v57  ;;  %1506 = vmatprep.subr.bf16.mxu1 %v3920_v52 }
 0x3ff   : > { %1466 = vmatpush1.bf16.msra.mxu0 %v3925_v63  ;;  %1507 = vmatpush1.bf16.msra.mxu1 %v3931_v60 }
 0x402   : > { %1484 = vmatmul.mubr.bf16.vlgmr.msra.gmra.mrb[4].mxu0 %v1441_v54  ;;  %1525 = vmatmul.mubr.bf16.vlgmr.msra.gmra.mrb[4].mxu1 %v1441_v54 }
 0x4d5   : > { %v1485_v53 = vpop.f32.mrb[4].mxu0  ;;  %v1526_v62 = vpop.f32.mrb[4].mxu1 }
 0x4d6   : > { %v1533_v0 = vadd.f32 %v1485_v53, %v1447_v51  ;;  %v1487_v1 = vpop.f32.mrb[5].mxu0  ;;  %v1528_v2 = vpop.f32.mrb[5].mxu1  ;;  %v1535_v14 = vadd.f32 %v1526_v62, %v1449_v11 }
 0x4d7   : > { %v1534_v5 = vadd.f32 %v1487_v1, %v1448_v55  ;;  %v1489_v37 = vpop.f32.mrb[6].mxu0  ;;  %v1530_v7 = vpop.f32.mrb[6].mxu1  ;;  %v1536_v19 = vadd.f32 %v1528_v2, %v1450_v15 }
 0x4d8   : > { %v2651_v50 = vmul.f32 -1.442695, %v1533_v0  ;;  %v1490_v42 = vpop.f32.mrb[7].mxu0  ;;  %v1531_v9 = vpop.f32.mrb[7].mxu1  ;;  %v2653_v18 = vmul.f32 -1.442695, %v1535_v14 }
 0x4d9   : > { %v2652_v10 = vmul.f32 -1.442695, %v1534_v5 }
 0x4da   : > { %2829 = vpow2.f32 %v2651_v50 }
 0x4db   : > { %2831 = vpow2.f32 %v2652_v10 }
 0x4dc   : > { %2833 = vpow2.f32 %v2653_v18 }
 0x4dd   : > { %2835 = vtanh.f32 %v1536_v19 }
 0x4e4   : > { %v2830_v22 = vpop.eup %2829 }
 0x4e5   : > { %v2832_v23 = vpop.eup %2831  ;;  %v1546_v26 = vadd.f32 1.0, %v2830_v22 }
 0x4e6   : > { %v1547_v27 = vadd.f32 1.0, %v2832_v23  ;;  %v2834_v30 = vpop.eup %2833 }
 0x4e7   : > { %2837 = vrcp.f32 %v1546_v26  ;;  %v2836_v31 = vpop.eup %2835  ;;  %v1548_v61 = vadd.f32 1.0, %v2834_v30 }
 0x4e8   : > { %2839 = vrcp.f32 %v1547_v27 }
 0x4e9   : > { %2841 = vrcp.f32 %v1548_v61 }
 0x4f1   : > { %v2838_v58 = vpop.eup %2837 }
 0x4f2   : > { %v2840_v45 = vpop.eup %2839  ;;  %v1557_v59 = vmul.f32 %v2838_v58, %v2836_v31 }
 0x4f3   : > { %v1556_v54 = vmul.f32 %v2840_v45, %v3938_v48  ;;  %v2842_v55 = vpop.eup %2841 }
 0x4f5   : > { %v3984_v51 = vadd.f32 %v1557_v59, %v1556_v54 }
 0x4f7   : > { %2843 = vtanh.f32 %v3984_v51 }
 0x4fe   : > { %1564 = sbr.rel (%p3943_p10) target bundleno = 1287 (0x507), region = 76 }
 0x501   : > { %v2844_v53 = vpop.eup %2843 }
 0x502   : > { %v1560_v62 = vmul.f32 %v2844_v53, %v2842_v55 }
 0x504   : > { %v1561_v0 = vpack.c.bf16 %v1560_v62, %v1560_v62 }
 0x506   : > { %1568 = vst [vmem:[#allocation2 + $0x4] sm:$0xf] %v1561_v0 }
 0x507 PF: > { %1574 = vmatprep.subr.bf16.mxu0 %v3776_v3  ;;  %1615 = vmatprep.subr.bf16.mxu1 %v3788_v44  ;;  %v1570_v48 = vld [vmem:[#allocation3 + $0x40] sm:$0xff]  ;;  %v1571_v1 = vld [vmem:[#allocation3 + $0x48] sm:$0xff]  ;;  %v1572_v19 = vld [vmem:[#allocation3 + $0x50] sm:$0xff] }
 0x508   : > { %1575 = vmatpush1.bf16.msra.mxu0 %v3780_v46  ;;  %1616 = vmatpush1.bf16.msra.mxu1 %v3793_v56  ;;  %v1573_v23 = vld [vmem:[#allocation3 + $0x58] sm:$0xff] }
 0x509   : > { %1576 = vmatprep.subr.bf16.mxu0 %v3784_v49  ;;  %1617 = vmatprep.subr.bf16.mxu1 %v3797_v4 }
 0x50a   : > { %1606 = vmatprep.mubr.bf16.mxu0 %v3137_v36  ;;  %1647 = vmatprep.mubr.bf16.mxu1 %v3137_v36 }
 0x50c   : > { %1577 = vmatpush1.bf16.msra.mxu0 %v3802_v32  ;;  %1618 = vmatpush1.bf16.msra.mxu1 %v3813_v33 }
 0x50d   : > { %1578 = vmatprep.subr.bf16.mxu0 %v3808_v34  ;;  %1619 = vmatprep.subr.bf16.mxu1 %v3818_v35 }
 0x510   : > { %1579 = vmatpush1.bf16.msra.mxu0 %v3824_v38  ;;  %1620 = vmatpush1.bf16.msra.mxu1 %v3834_v6 }
 0x511   : > { %1580 = vmatprep.subr.bf16.mxu0 %v3829_v39  ;;  %1621 = vmatprep.subr.bf16.mxu1 %v3839_v8 }
 0x514   : > { %1581 = vmatpush1.bf16.msra.mxu0 %v3845_v40  ;;  %1622 = vmatpush1.bf16.msra.mxu1 %v3855_v43 }
 0x515   : > { %1582 = vmatprep.subr.bf16.mxu0 %v3850_v41  ;;  %1623 = vmatprep.subr.bf16.mxu1 %v3860_v12 }
 0x518   : > { %1583 = vmatpush1.bf16.msra.mxu0 %v3865_v13  ;;  %1624 = vmatpush1.bf16.msra.mxu1 %v3875_v17 }
 0x519   : > { %1584 = vmatprep.subr.bf16.mxu0 %v3870_v16  ;;  %1625 = vmatprep.subr.bf16.mxu1 %v3880_v20 }
 0x51c   : > { %1585 = vmatpush1.bf16.msra.mxu0 %v3885_v21  ;;  %1626 = vmatpush1.bf16.msra.mxu1 %v3895_v25 }
 0x51d   : > { %1586 = vmatprep.subr.bf16.mxu0 %v3890_v24  ;;  %1627 = vmatprep.subr.bf16.mxu1 %v3900_v28 }
 0x520   : > { %1587 = vmatpush1.bf16.msra.mxu0 %v3905_v29  ;;  %1628 = vmatpush1.bf16.msra.mxu1 %v3915_v47 }
 0x521   : > { %1588 = vmatprep.subr.bf16.mxu0 %v3910_v57  ;;  %1629 = vmatprep.subr.bf16.mxu1 %v3920_v52 }
 0x524   : > { %1589 = vmatpush1.bf16.msra.mxu0 %v3925_v63  ;;  %1630 = vmatpush1.bf16.msra.mxu1 %v3931_v60 }
 0x527   : > { %1607 = vmatmul.mubr.bf16.vlgmr.msra.gmra.mrb[8].mxu0 %v1561_v0  ;;  %1648 = vmatmul.mubr.bf16.vlgmr.msra.gmra.mrb[8].mxu1 %v1561_v0 }
 0x5fa   : > { %v1608_v2 = vpop.f32.mrb[8].mxu0  ;;  %v1649_v5 = vpop.f32.mrb[8].mxu1 }
 0x5fb   : > { %v1656_v37 = vadd.f32 %v1608_v2, %v1570_v48  ;;  %v1610_v7 = vpop.f32.mrb[9].mxu0  ;;  %v1651_v50 = vpop.f32.mrb[9].mxu1  ;;  %v1658_v22 = vadd.f32 %v1649_v5, %v1572_v19 }
 0x5fc   : > { %v1657_v42 = vadd.f32 %v1610_v7, %v1571_v1  ;;  %v1612_v9 = vpop.f32.mrb[10].mxu0  ;;  %v1653_v10 = vpop.f32.mrb[10].mxu1  ;;  %v1659_v27 = vadd.f32 %v1651_v50, %v1573_v23 }
 0x5fd   : > { %v2655_v11 = vmul.f32 -1.442695, %v1656_v37  ;;  %v1613_v14 = vpop.f32.mrb[11].mxu0  ;;  %v1654_v15 = vpop.f32.mrb[11].mxu1  ;;  %v2657_v26 = vmul.f32 -1.442695, %v1658_v22 }
 0x5fe   : > { %v2656_v18 = vmul.f32 -1.442695, %v1657_v42 }
 0x5ff   : > { %2845 = vpow2.f32 %v2655_v11 }
 0x600   : > { %2847 = vpow2.f32 %v2656_v18 }
 0x601   : > { %2849 = vpow2.f32 %v2657_v26 }
 0x602   : > { %2851 = vtanh.f32 %v1659_v27 }
 0x609   : > { %v2846_v30 = vpop.eup %2845 }
 0x60a   : > { %v2848_v31 = vpop.eup %2847  ;;  %v1669_v58 = vadd.f32 1.0, %v2846_v30 }
 0x60b   : > { %v1670_v61 = vadd.f32 1.0, %v2848_v31  ;;  %v2850_v45 = vpop.eup %2849 }
 0x60c   : > { %2853 = vrcp.f32 %v1669_v58  ;;  %v2852_v59 = vpop.eup %2851  ;;  %v1671_v55 = vadd.f32 1.0, %v2850_v45 }
 0x60d   : > { %2855 = vrcp.f32 %v1670_v61 }
 0x60e   : > { %2857 = vrcp.f32 %v1671_v55 }
 0x616   : > { %v2854_v54 = vpop.eup %2853 }
 0x617   : > { %v2856_v53 = vpop.eup %2855  ;;  %v1680_v62 = vmul.f32 %v2854_v54, %v2852_v59 }
 0x618   : > { %v1679_v0 = vmul.f32 %v2856_v53, %v3984_v51  ;;  %v2858_v1 = vpop.eup %2857 }
 0x61a   : > { %v4024_v48 = vadd.f32 %v1680_v62, %v1679_v0 }
 0x61c   : > { %2859 = vtanh.f32 %v4024_v48 }
 0x623   : > { %1687 = sbr.rel (%p3943_p10) target bundleno = 1580 (0x62c), region = 80 }
 0x626   : > { %v2860_v2 = vpop.eup %2859 }
 0x627   : > { %v1683_v5 = vmul.f32 %v2860_v2, %v2858_v1 }
 0x629   : > { %v1684_v37 = vpack.c.bf16 %v1683_v5, %v1683_v5 }
 0x62b   : > { %1691 = vst [vmem:[#allocation2 + $0x8] sm:$0xf] %v1684_v37 }
 0x62c PF: > { %1697 = vmatprep.subr.bf16.mxu0 %v3776_v3  ;;  %1738 = vmatprep.subr.bf16.mxu1 %v3788_v44  ;;  %v1693_v51 = vld [vmem:[#allocation3 + $0x60] sm:$0xff]  ;;  %v1694_v7 = vld [vmem:[#allocation3 + $0x68] sm:$0xff]  ;;  %v1695_v27 = vld [vmem:[#allocation3 + $0x70] sm:$0xff] }
 0x62d   : > { %1698 = vmatpush1.bf16.msra.mxu0 %v3780_v46  ;;  %1739 = vmatpush1.bf16.msra.mxu1 %v3793_v56  ;;  %v1696_v31 = vld [vmem:[#allocation3 + $0x78] sm:$0xff] }
 0x62e   : > { %1699 = vmatprep.subr.bf16.mxu0 %v3784_v49  ;;  %1740 = vmatprep.subr.bf16.mxu1 %v3797_v4 }
 0x62f   : > { %1729 = vmatprep.mubr.bf16.mxu0 %v3137_v36  ;;  %1770 = vmatprep.mubr.bf16.mxu1 %v3137_v36 }
 0x631   : > { %1700 = vmatpush1.bf16.msra.mxu0 %v3802_v32  ;;  %1741 = vmatpush1.bf16.msra.mxu1 %v3813_v33 }
 0x632   : > { %1701 = vmatprep.subr.bf16.mxu0 %v3808_v34  ;;  %1742 = vmatprep.subr.bf16.mxu1 %v3818_v35 }
 0x635   : > { %1702 = vmatpush1.bf16.msra.mxu0 %v3824_v38  ;;  %1743 = vmatpush1.bf16.msra.mxu1 %v3834_v6 }
 0x636   : > { %1703 = vmatprep.subr.bf16.mxu0 %v3829_v39  ;;  %1744 = vmatprep.subr.bf16.mxu1 %v3839_v8 }
 0x639   : > { %1704 = vmatpush1.bf16.msra.mxu0 %v3845_v40  ;;  %1745 = vmatpush1.bf16.msra.mxu1 %v3855_v43 }
 0x63a   : > { %1705 = vmatprep.subr.bf16.mxu0 %v3850_v41  ;;  %1746 = vmatprep.subr.bf16.mxu1 %v3860_v12 }
 0x63d   : > { %1706 = vmatpush1.bf16.msra.mxu0 %v3865_v13  ;;  %1747 = vmatpush1.bf16.msra.mxu1 %v3875_v17 }
 0x63e   : > { %1707 = vmatprep.subr.bf16.mxu0 %v3870_v16  ;;  %1748 = vmatprep.subr.bf16.mxu1 %v3880_v20 }
 0x641   : > { %1708 = vmatpush1.bf16.msra.mxu0 %v3885_v21  ;;  %1749 = vmatpush1.bf16.msra.mxu1 %v3895_v25 }
 0x642   : > { %1709 = vmatprep.subr.bf16.mxu0 %v3890_v24  ;;  %1750 = vmatprep.subr.bf16.mxu1 %v3900_v28 }
 0x645   : > { %1710 = vmatpush1.bf16.msra.mxu0 %v3905_v29  ;;  %1751 = vmatpush1.bf16.msra.mxu1 %v3915_v47 }
 0x646   : > { %1711 = vmatprep.subr.bf16.mxu0 %v3910_v57  ;;  %1752 = vmatprep.subr.bf16.mxu1 %v3920_v52 }
 0x649   : > { %1712 = vmatpush1.bf16.msra.mxu0 %v3925_v63  ;;  %1753 = vmatpush1.bf16.msra.mxu1 %v3931_v60 }
 0x64c   : > { %1730 = vmatmul.mubr.bf16.vlgmr.msra.gmra.mrb[12].mxu0 %v1684_v37  ;;  %1771 = vmatmul.mubr.bf16.vlgmr.msra.gmra.mrb[12].mxu1 %v1684_v37 }
 0x71f   : > { %v1731_v50 = vpop.f32.mrb[12].mxu0  ;;  %v1772_v42 = vpop.f32.mrb[12].mxu1 }
 0x720   : > { %v1779_v9 = vadd.f32 %v1731_v50, %v1693_v51  ;;  %v1733_v10 = vpop.f32.mrb[13].mxu0  ;;  %v1774_v11 = vpop.f32.mrb[13].mxu1  ;;  %v1781_v30 = vadd.f32 %v1772_v42, %v1695_v27 }
 0x721   : > { %v1780_v14 = vadd.f32 %v1733_v10, %v1694_v7  ;;  %v1735_v15 = vpop.f32.mrb[14].mxu0  ;;  %v1776_v18 = vpop.f32.mrb[14].mxu1  ;;  %v1782_v61 = vadd.f32 %v1774_v11, %v1696_v31 }
 0x722   : > { %v2659_v19 = vmul.f32 -1.442695, %v1779_v9  ;;  %v1736_v22 = vpop.f32.mrb[15].mxu0  ;;  %v1777_v23 = vpop.f32.mrb[15].mxu1  ;;  %v2661_v58 = vmul.f32 -1.442695, %v1781_v30 }
 0x723   : > { %v2660_v26 = vmul.f32 -1.442695, %v1780_v14 }
 0x724   : > { %2861 = vpow2.f32 %v2659_v19 }
 0x725   : > { %2863 = vpow2.f32 %v2660_v26 }
 0x726   : > { %2865 = vpow2.f32 %v2661_v58 }
 0x727   : > { %2867 = vtanh.f32 %v1782_v61 }
 0x72e   : > { %v2862_v45 = vpop.eup %2861 }
 0x72f   : > { %v2864_v59 = vpop.eup %2863  ;;  %v1792_v54 = vadd.f32 1.0, %v2862_v45 }
 0x730   : > { %v1793_v55 = vadd.f32 1.0, %v2864_v59  ;;  %v2866_v53 = vpop.eup %2865 }
 0x731   : > { %2869 = vrcp.f32 %v1792_v54  ;;  %v2868_v62 = vpop.eup %2867  ;;  %v1794_v1 = vadd.f32 1.0, %v2866_v53 }
 0x732   : > { %2871 = vrcp.f32 %v1793_v55 }
 0x733   : > { %2873 = vrcp.f32 %v1794_v1 }
 0x73b   : > { %v2870_v0 = vpop.eup %2869 }
 0x73c   : > { %v2872_v2 = vpop.eup %2871  ;;  %v1803_v5 = vmul.f32 %v2870_v0, %v2868_v62 }
 0x73d   : > { %v1802_v37 = vmul.f32 %v2872_v2, %v4024_v48  ;;  %v2874_v7 = vpop.eup %2873 }
 0x73f   : > { %v4064_v51 = vadd.f32 %v1803_v5, %v1802_v37 }
 0x741   : > { %2875 = vtanh.f32 %v4064_v51 }
 0x748   : > { %1810 = sbr.rel (%p3943_p10) target bundleno = 1873 (0x751), region = 84 }
 0x74b   : > { %v2876_v50 = vpop.eup %2875 }
 0x74c   : > { %v1806_v42 = vmul.f32 %v2876_v50, %v2874_v7 }
 0x74e   : > { %v1807_v9 = vpack.c.bf16 %v1806_v42, %v1806_v42 }
 0x750   : > { %1814 = vst [vmem:[#allocation2 + $0xc] sm:$0xf] %v1807_v9 }
 0x751 PF: > { %1820 = vmatprep.subr.bf16.mxu0 %v3776_v3  ;;  %1861 = vmatprep.subr.bf16.mxu1 %v3788_v44  ;;  %v1816_v48 = vld [vmem:[#allocation3 + $0x80] sm:$0xff]  ;;  %v1817_v10 = vld [vmem:[#allocation3 + $0x88] sm:$0xff]  ;;  %v1818_v61 = vld [vmem:[#allocation3 + $0x90] sm:$0xff] }
 0x752   : > { %1821 = vmatpush1.bf16.msra.mxu0 %v3780_v46  ;;  %1862 = vmatpush1.bf16.msra.mxu1 %v3793_v56  ;;  %v1819_v59 = vld [vmem:[#allocation3 + $0x98] sm:$0xff] }
 0x753   : > { %1822 = vmatprep.subr.bf16.mxu0 %v3784_v49  ;;  %1863 = vmatprep.subr.bf16.mxu1 %v3797_v4 }
 0x754   : > { %1852 = vmatprep.mubr.bf16.mxu0 %v3137_v36  ;;  %1893 = vmatprep.mubr.bf16.mxu1 %v3137_v36 }
 0x756   : > { %1823 = vmatpush1.bf16.msra.mxu0 %v3802_v32  ;;  %1864 = vmatpush1.bf16.msra.mxu1 %v3813_v33 }
 0x757   : > { %1824 = vmatprep.subr.bf16.mxu0 %v3808_v34  ;;  %1865 = vmatprep.subr.bf16.mxu1 %v3818_v35 }
 0x75a   : > { %1825 = vmatpush1.bf16.msra.mxu0 %v3824_v38  ;;  %1866 = vmatpush1.bf16.msra.mxu1 %v3834_v6 }
 0x75b   : > { %1826 = vmatprep.subr.bf16.mxu0 %v3829_v39  ;;  %1867 = vmatprep.subr.bf16.mxu1 %v3839_v8 }
 0x75e   : > { %1827 = vmatpush1.bf16.msra.mxu0 %v3845_v40  ;;  %1868 = vmatpush1.bf16.msra.mxu1 %v3855_v43 }
 0x75f   : > { %1828 = vmatprep.subr.bf16.mxu0 %v3850_v41  ;;  %1869 = vmatprep.subr.bf16.mxu1 %v3860_v12 }
 0x762   : > { %1829 = vmatpush1.bf16.msra.mxu0 %v3865_v13  ;;  %1870 = vmatpush1.bf16.msra.mxu1 %v3875_v17 }
 0x763   : > { %1830 = vmatprep.subr.bf16.mxu0 %v3870_v16  ;;  %1871 = vmatprep.subr.bf16.mxu1 %v3880_v20 }
 0x766   : > { %1831 = vmatpush1.bf16.msra.mxu0 %v3885_v21  ;;  %1872 = vmatpush1.bf16.msra.mxu1 %v3895_v25 }
 0x767   : > { %1832 = vmatprep.subr.bf16.mxu0 %v3890_v24  ;;  %1873 = vmatprep.subr.bf16.mxu1 %v3900_v28 }
 0x76a   : > { %1833 = vmatpush1.bf16.msra.mxu0 %v3905_v29  ;;  %1874 = vmatpush1.bf16.msra.mxu1 %v3915_v47 }
 0x76b   : > { %1834 = vmatprep.subr.bf16.mxu0 %v3910_v57  ;;  %1875 = vmatprep.subr.bf16.mxu1 %v3920_v52 }
 0x76e   : > { %1835 = vmatpush1.bf16.msra.mxu0 %v3925_v63  ;;  %1876 = vmatpush1.bf16.msra.mxu1 %v3931_v60 }
 0x771   : > { %1853 = vmatmul.mubr.bf16.vlgmr.msra.gmra.mrb[16].mxu0 %v1807_v9  ;;  %1894 = vmatmul.mubr.bf16.vlgmr.msra.gmra.mrb[16].mxu1 %v1807_v9 }
 0x844   : > { %v1854_v11 = vpop.f32.mrb[16].mxu0  ;;  %v1895_v14 = vpop.f32.mrb[16].mxu1 }
 0x845   : > { %v1902_v15 = vadd.f32 %v1854_v11, %v1816_v48  ;;  %v1856_v18 = vpop.f32.mrb[17].mxu0  ;;  %v1897_v19 = vpop.f32.mrb[17].mxu1  ;;  %v1904_v45 = vadd.f32 %v1895_v14, %v1818_v61 }
 0x846   : > { %v1903_v22 = vadd.f32 %v1856_v18, %v1817_v10  ;;  %v1858_v23 = vpop.f32.mrb[18].mxu0  ;;  %v1899_v26 = vpop.f32.mrb[18].mxu1  ;;  %v1905_v55 = vadd.f32 %v1897_v19, %v1819_v59 }
 0x847   : > { %v2663_v27 = vmul.f32 -1.442695, %v1902_v15  ;;  %v1859_v30 = vpop.f32.mrb[19].mxu0  ;;  %v1900_v31 = vpop.f32.mrb[19].mxu1  ;;  %v2665_v54 = vmul.f32 -1.442695, %v1904_v45 }
 0x848   : > { %v2664_v58 = vmul.f32 -1.442695, %v1903_v22 }
 0x849   : > { %2877 = vpow2.f32 %v2663_v27 }
 0x84a   : > { %2879 = vpow2.f32 %v2664_v58 }
 0x84b   : > { %2881 = vpow2.f32 %v2665_v54 }
 0x84c   : > { %2883 = vtanh.f32 %v1905_v55 }
 0x853   : > { %v2878_v53 = vpop.eup %2877 }
 0x854   : > { %v2880_v62 = vpop.eup %2879  ;;  %v1915_v0 = vadd.f32 1.0, %v2878_v53 }
 0x855   : > { %v1916_v1 = vadd.f32 1.0, %v2880_v62  ;;  %v2882_v2 = vpop.eup %2881 }
 0x856   : > { %2885 = vrcp.f32 %v1915_v0  ;;  %v2884_v5 = vpop.eup %2883  ;;  %v1917_v7 = vadd.f32 1.0, %v2882_v2 }
 0x857   : > { %2887 = vrcp.f32 %v1916_v1 }
 0x858   : > { %2889 = vrcp.f32 %v1917_v7 }
 0x860   : > { %v2886_v37 = vpop.eup %2885 }
 0x861   : > { %v2888_v50 = vpop.eup %2887  ;;  %v1926_v42 = vmul.f32 %v2886_v37, %v2884_v5 }
 0x862   : > { %v1925_v9 = vmul.f32 %v2888_v50, %v4064_v51  ;;  %v2890_v10 = vpop.eup %2889 }
 0x864   : > { %v4104_v48 = vadd.f32 %v1926_v42, %v1925_v9 }
 0x866   : > { %2891 = vtanh.f32 %v4104_v48 }
 0x86d   : > { %1933 = sbr.rel (%p3943_p10) target bundleno = 2166 (0x876), region = 88 }
 0x870   : > { %v2892_v11 = vpop.eup %2891 }
 0x871   : > { %v1929_v14 = vmul.f32 %v2892_v11, %v2890_v10 }
 0x873   : > { %v1930_v15 = vpack.c.bf16 %v1929_v14, %v1929_v14 }
 0x875   : > { %1937 = vst [vmem:[#allocation2 + $0x10] sm:$0xf] %v1930_v15 }
 0x876 PF: > { %1943 = vmatprep.subr.bf16.mxu0 %v3776_v3  ;;  %1984 = vmatprep.subr.bf16.mxu1 %v3788_v44  ;;  %v1939_v51 = vld [vmem:[#allocation3 + $0xa0] sm:$0xff]  ;;  %v1940_v18 = vld [vmem:[#allocation3 + $0xa8] sm:$0xff]  ;;  %v1941_v55 = vld [vmem:[#allocation3 + $0xb0] sm:$0xff] }
 0x877   : > { %1944 = vmatpush1.bf16.msra.mxu0 %v3780_v46  ;;  %1985 = vmatpush1.bf16.msra.mxu1 %v3793_v56  ;;  %v1942_v62 = vld [vmem:[#allocation3 + $0xb8] sm:$0xff] }
 0x878   : > { %1945 = vmatprep.subr.bf16.mxu0 %v3784_v49  ;;  %1986 = vmatprep.subr.bf16.mxu1 %v3797_v4 }
 0x879   : > { %1975 = vmatprep.mubr.bf16.mxu0 %v3137_v36  ;;  %2016 = vmatprep.mubr.bf16.mxu1 %v3137_v36 }
 0x87b   : > { %1946 = vmatpush1.bf16.msra.mxu0 %v3802_v32  ;;  %1987 = vmatpush1.bf16.msra.mxu1 %v3813_v33 }
 0x87c   : > { %1947 = vmatprep.subr.bf16.mxu0 %v3808_v34  ;;  %1988 = vmatprep.subr.bf16.mxu1 %v3818_v35 }
 0x87f   : > { %1948 = vmatpush1.bf16.msra.mxu0 %v3824_v38  ;;  %1989 = vmatpush1.bf16.msra.mxu1 %v3834_v6 }
 0x880   : > { %1949 = vmatprep.subr.bf16.mxu0 %v3829_v39  ;;  %1990 = vmatprep.subr.bf16.mxu1 %v3839_v8 }
 0x883   : > { %1950 = vmatpush1.bf16.msra.mxu0 %v3845_v40  ;;  %1991 = vmatpush1.bf16.msra.mxu1 %v3855_v43 }
 0x884   : > { %1951 = vmatprep.subr.bf16.mxu0 %v3850_v41  ;;  %1992 = vmatprep.subr.bf16.mxu1 %v3860_v12 }
 0x887   : > { %1952 = vmatpush1.bf16.msra.mxu0 %v3865_v13  ;;  %1993 = vmatpush1.bf16.msra.mxu1 %v3875_v17 }
 0x888   : > { %1953 = vmatprep.subr.bf16.mxu0 %v3870_v16  ;;  %1994 = vmatprep.subr.bf16.mxu1 %v3880_v20 }
 0x88b   : > { %1954 = vmatpush1.bf16.msra.mxu0 %v3885_v21  ;;  %1995 = vmatpush1.bf16.msra.mxu1 %v3895_v25 }
 0x88c   : > { %1955 = vmatprep.subr.bf16.mxu0 %v3890_v24  ;;  %1996 = vmatprep.subr.bf16.mxu1 %v3900_v28 }
 0x88f   : > { %1956 = vmatpush1.bf16.msra.mxu0 %v3905_v29  ;;  %1997 = vmatpush1.bf16.msra.mxu1 %v3915_v47 }
 0x890   : > { %1957 = vmatprep.subr.bf16.mxu0 %v3910_v57  ;;  %1998 = vmatprep.subr.bf16.mxu1 %v3920_v52 }
 0x893   : > { %1958 = vmatpush1.bf16.msra.mxu0 %v3925_v63  ;;  %1999 = vmatpush1.bf16.msra.mxu1 %v3931_v60 }
 0x896   : > { %1976 = vmatmul.mubr.bf16.vlgmr.msra.gmra.mrb[20].mxu0 %v1930_v15  ;;  %2017 = vmatmul.mubr.bf16.vlgmr.msra.gmra.mrb[20].mxu1 %v1930_v15 }
 0x969   : > { %v1977_v19 = vpop.f32.mrb[20].mxu0  ;;  %v2018_v22 = vpop.f32.mrb[20].mxu1 }
 0x96a   : > { %v2025_v23 = vadd.f32 %v1977_v19, %v1939_v51  ;;  %v1979_v26 = vpop.f32.mrb[21].mxu0  ;;  %v2020_v27 = vpop.f32.mrb[21].mxu1  ;;  %v2027_v53 = vadd.f32 %v2018_v22, %v1941_v55 }
 0x96b   : > { %v2026_v30 = vadd.f32 %v1979_v26, %v1940_v18  ;;  %v1981_v31 = vpop.f32.mrb[22].mxu0  ;;  %v2022_v58 = vpop.f32.mrb[22].mxu1  ;;  %v2028_v1 = vadd.f32 %v2020_v27, %v1942_v62 }
 0x96c   : > { %v2667_v61 = vmul.f32 -1.442695, %v2025_v23  ;;  %v1982_v45 = vpop.f32.mrb[23].mxu0  ;;  %v2023_v59 = vpop.f32.mrb[23].mxu1  ;;  %v2669_v0 = vmul.f32 -1.442695, %v2027_v53 }
 0x96d   : > { %v2668_v54 = vmul.f32 -1.442695, %v2026_v30 }
 0x96e   : > { %2893 = vpow2.f32 %v2667_v61 }
 0x96f   : > { %2895 = vpow2.f32 %v2668_v54 }
 0x970   : > { %2897 = vpow2.f32 %v2669_v0 }
 0x971   : > { %2899 = vtanh.f32 %v2028_v1 }
 0x978   : > { %v2894_v2 = vpop.eup %2893 }
 0x979   : > { %v2896_v5 = vpop.eup %2895  ;;  %v2038_v37 = vadd.f32 1.0, %v2894_v2 }
 0x97a   : > { %v2039_v7 = vadd.f32 1.0, %v2896_v5  ;;  %v2898_v50 = vpop.eup %2897 }
 0x97b   : > { %2901 = vrcp.f32 %v2038_v37  ;;  %v2900_v42 = vpop.eup %2899  ;;  %v2040_v10 = vadd.f32 1.0, %v2898_v50 }
 0x97c   : > { %2903 = vrcp.f32 %v2039_v7 }
 0x97d   : > { %2905 = vrcp.f32 %v2040_v10 }
 0x985   : > { %v2902_v9 = vpop.eup %2901 }
 0x986   : > { %v2904_v11 = vpop.eup %2903  ;;  %v2049_v14 = vmul.f32 %v2902_v9, %v2900_v42 }
 0x987   : > { %v2048_v15 = vmul.f32 %v2904_v11, %v4104_v48  ;;  %v2906_v18 = vpop.eup %2905 }
 0x989   : > { %v4144_v51 = vadd.f32 %v2049_v14, %v2048_v15 }
 0x98b   : > { %2907 = vtanh.f32 %v4144_v51 }
 0x992   : > { %2056 = sbr.rel (%p3943_p10) target bundleno = 2459 (0x99b), region = 92 }
 0x995   : > { %v2908_v19 = vpop.eup %2907 }
 0x996   : > { %v2052_v22 = vmul.f32 %v2908_v19, %v2906_v18 }
 0x998   : > { %v2053_v23 = vpack.c.bf16 %v2052_v22, %v2052_v22 }
 0x99a   : > { %2060 = vst [vmem:[#allocation2 + $0x14] sm:$0xf] %v2053_v23 }
 0x99b PF: > { %2066 = vmatprep.subr.bf16.mxu0 %v3776_v3  ;;  %2107 = vmatprep.subr.bf16.mxu1 %v3788_v44  ;;  %v2062_v48 = vld [vmem:[#allocation3 + $0xc0] sm:$0xff]  ;;  %v2063_v26 = vld [vmem:[#allocation3 + $0xc8] sm:$0xff]  ;;  %v2064_v1 = vld [vmem:[#allocation3 + $0xd0] sm:$0xff] }
 0x99c   : > { %2067 = vmatpush1.bf16.msra.mxu0 %v3780_v46  ;;  %2108 = vmatpush1.bf16.msra.mxu1 %v3793_v56  ;;  %v2065_v5 = vld [vmem:[#allocation3 + $0xd8] sm:$0xff] }
 0x99d   : > { %2068 = vmatprep.subr.bf16.mxu0 %v3784_v49  ;;  %2109 = vmatprep.subr.bf16.mxu1 %v3797_v4 }
 0x99e   : > { %2098 = vmatprep.mubr.bf16.mxu0 %v3137_v36  ;;  %2139 = vmatprep.mubr.bf16.mxu1 %v3137_v36 }
 0x9a0   : > { %2069 = vmatpush1.bf16.msra.mxu0 %v3802_v32  ;;  %2110 = vmatpush1.bf16.msra.mxu1 %v3813_v33 }
 0x9a1   : > { %2070 = vmatprep.subr.bf16.mxu0 %v3808_v34  ;;  %2111 = vmatprep.subr.bf16.mxu1 %v3818_v35 }
 0x9a4   : > { %2071 = vmatpush1.bf16.msra.mxu0 %v3824_v38  ;;  %2112 = vmatpush1.bf16.msra.mxu1 %v3834_v6 }
 0x9a5   : > { %2072 = vmatprep.subr.bf16.mxu0 %v3829_v39  ;;  %2113 = vmatprep.subr.bf16.mxu1 %v3839_v8 }
 0x9a8   : > { %2073 = vmatpush1.bf16.msra.mxu0 %v3845_v40  ;;  %2114 = vmatpush1.bf16.msra.mxu1 %v3855_v43 }
 0x9a9   : > { %2074 = vmatprep.subr.bf16.mxu0 %v3850_v41  ;;  %2115 = vmatprep.subr.bf16.mxu1 %v3860_v12 }
 0x9ac   : > { %2075 = vmatpush1.bf16.msra.mxu0 %v3865_v13  ;;  %2116 = vmatpush1.bf16.msra.mxu1 %v3875_v17 }
 0x9ad   : > { %2076 = vmatprep.subr.bf16.mxu0 %v3870_v16  ;;  %2117 = vmatprep.subr.bf16.mxu1 %v3880_v20 }
 0x9b0   : > { %2077 = vmatpush1.bf16.msra.mxu0 %v3885_v21  ;;  %2118 = vmatpush1.bf16.msra.mxu1 %v3895_v25 }
 0x9b1   : > { %2078 = vmatprep.subr.bf16.mxu0 %v3890_v24  ;;  %2119 = vmatprep.subr.bf16.mxu1 %v3900_v28 }
 0x9b4   : > { %2079 = vmatpush1.bf16.msra.mxu0 %v3905_v29  ;;  %2120 = vmatpush1.bf16.msra.mxu1 %v3915_v47 }
 0x9b5   : > { %2080 = vmatprep.subr.bf16.mxu0 %v3910_v57  ;;  %2121 = vmatprep.subr.bf16.mxu1 %v3920_v52 }
 0x9b8   : > { %2081 = vmatpush1.bf16.msra.mxu0 %v3925_v63  ;;  %2122 = vmatpush1.bf16.msra.mxu1 %v3931_v60 }
 0x9bb   : > { %2099 = vmatmul.mubr.bf16.vlgmr.msra.gmra.mrb[24].mxu0 %v2053_v23  ;;  %2140 = vmatmul.mubr.bf16.vlgmr.msra.gmra.mrb[24].mxu1 %v2053_v23 }
 0xa8e   : > { %v2100_v27 = vpop.f32.mrb[24].mxu0  ;;  %v2141_v30 = vpop.f32.mrb[24].mxu1 }
 0xa8f   : > { %v2148_v31 = vadd.f32 %v2100_v27, %v2062_v48  ;;  %v2102_v58 = vpop.f32.mrb[25].mxu0  ;;  %v2143_v61 = vpop.f32.mrb[25].mxu1  ;;  %v2150_v2 = vadd.f32 %v2141_v30, %v2064_v1 }
 0xa90   : > { %v2149_v45 = vadd.f32 %v2102_v58, %v2063_v26  ;;  %v2104_v59 = vpop.f32.mrb[26].mxu0  ;;  %v2145_v54 = vpop.f32.mrb[26].mxu1  ;;  %v2151_v7 = vadd.f32 %v2143_v61, %v2065_v5 }
 0xa91   : > { %v2671_v55 = vmul.f32 -1.442695, %v2148_v31  ;;  %v2105_v53 = vpop.f32.mrb[27].mxu0  ;;  %v2146_v62 = vpop.f32.mrb[27].mxu1  ;;  %v2673_v37 = vmul.f32 -1.442695, %v2150_v2 }
 0xa92   : > { %v2672_v0 = vmul.f32 -1.442695, %v2149_v45 }
 0xa93   : > { %2909 = vpow2.f32 %v2671_v55 }
 0xa94   : > { %2911 = vpow2.f32 %v2672_v0 }
 0xa95   : > { %2913 = vpow2.f32 %v2673_v37 }
 0xa96   : > { %2915 = vtanh.f32 %v2151_v7 }
 0xa9d   : > { %v2910_v50 = vpop.eup %2909 }
 0xa9e   : > { %v2912_v42 = vpop.eup %2911  ;;  %v2161_v9 = vadd.f32 1.0, %v2910_v50 }
 0xa9f   : > { %v2162_v10 = vadd.f32 1.0, %v2912_v42  ;;  %v2914_v11 = vpop.eup %2913 }
 0xaa0   : > { %2917 = vrcp.f32 %v2161_v9  ;;  %v2916_v14 = vpop.eup %2915  ;;  %v2163_v18 = vadd.f32 1.0, %v2914_v11 }
 0xaa1   : > { %2919 = vrcp.f32 %v2162_v10 }
 0xaa2   : > { %2921 = vrcp.f32 %v2163_v18 }
 0xaaa   : > { %v2918_v15 = vpop.eup %2917 }
 0xaab   : > { %v2920_v19 = vpop.eup %2919  ;;  %v2172_v22 = vmul.f32 %v2918_v15, %v2916_v14 }
 0xaac   : > { %v2171_v23 = vmul.f32 %v2920_v19, %v4144_v51  ;;  %v2922_v26 = vpop.eup %2921 }
 0xaae   : > { %v4184_v48 = vadd.f32 %v2172_v22, %v2171_v23 }
 0xab0   : > { %2923 = vtanh.f32 %v4184_v48 }
 0xab7   : > { %2179 = sbr.rel (%p3943_p10) target bundleno = 2752 (0xac0), region = 96 }
 0xaba   : > { %v2924_v27 = vpop.eup %2923 }
 0xabb   : > { %v2175_v30 = vmul.f32 %v2924_v27, %v2922_v26 }
 0xabd   : > { %v2176_v31 = vpack.c.bf16 %v2175_v30, %v2175_v30 }
 0xabf   : > { %2183 = vst [vmem:[#allocation2 + $0x18] sm:$0xf] %v2176_v31 }
 0xac0 PF: > { %2189 = vmatprep.subr.bf16.mxu0 %v3776_v3  ;;  %2230 = vmatprep.subr.bf16.mxu1 %v3788_v44  ;;  %v2185_v3 = vld [vmem:[#allocation3 + $0xe0] sm:$0xff] }
 0xac1   : > { %2190 = vmatpush1.bf16.msra.mxu0 %v3780_v46  ;;  %2231 = vmatpush1.bf16.msra.mxu1 %v3793_v56  ;;  %v2186_v46 = vld [vmem:[#allocation3 + $0xe8] sm:$0xff] }
 0xac2   : > { %2191 = vmatprep.subr.bf16.mxu0 %v3784_v49  ;;  %2232 = vmatprep.subr.bf16.mxu1 %v3797_v4 }
 0xac3   : > { %2221 = vmatprep.mubr.bf16.mxu0 %v3137_v36  ;;  %2262 = vmatprep.mubr.bf16.mxu1 %v3137_v36 }
 0xac5   : > { %2192 = vmatpush1.bf16.msra.mxu0 %v3802_v32  ;;  %2233 = vmatpush1.bf16.msra.mxu1 %v3813_v33 }
 0xac6   : > { %2193 = vmatprep.subr.bf16.mxu0 %v3808_v34  ;;  %2234 = vmatprep.subr.bf16.mxu1 %v3818_v35 }
 0xac9   : > { %2194 = vmatpush1.bf16.msra.mxu0 %v3824_v38  ;;  %2235 = vmatpush1.bf16.msra.mxu1 %v3834_v6 }
 0xaca   : > { %2195 = vmatprep.subr.bf16.mxu0 %v3829_v39  ;;  %2236 = vmatprep.subr.bf16.mxu1 %v3839_v8  ;;  %v2187_v8 = vld [vmem:[#allocation3 + $0xf0] sm:$0xff] }
 0xacd   : > { %2196 = vmatpush1.bf16.msra.mxu0 %v3845_v40  ;;  %2237 = vmatpush1.bf16.msra.mxu1 %v3855_v43 }
 0xace   : > { %2197 = vmatprep.subr.bf16.mxu0 %v3850_v41  ;;  %2238 = vmatprep.subr.bf16.mxu1 %v3860_v12  ;;  %v2188_v41 = vld [vmem:[#allocation3 + $0xf8] sm:$0xff] }
 0xad1   : > { %2198 = vmatpush1.bf16.msra.mxu0 %v3865_v13  ;;  %2239 = vmatpush1.bf16.msra.mxu1 %v3875_v17 }
 0xad2   : > { %2199 = vmatprep.subr.bf16.mxu0 %v3870_v16  ;;  %2240 = vmatprep.subr.bf16.mxu1 %v3880_v20 }
 0xad5   : > { %2200 = vmatpush1.bf16.msra.mxu0 %v3885_v21  ;;  %2241 = vmatpush1.bf16.msra.mxu1 %v3895_v25 }
 0xad6   : > { %2201 = vmatprep.subr.bf16.mxu0 %v3890_v24  ;;  %2242 = vmatprep.subr.bf16.mxu1 %v3900_v28 }
 0xad9   : > { %2202 = vmatpush1.bf16.msra.mxu0 %v3905_v29  ;;  %2243 = vmatpush1.bf16.msra.mxu1 %v3915_v47 }
 0xada   : > { %2203 = vmatprep.subr.bf16.mxu0 %v3910_v57  ;;  %2244 = vmatprep.subr.bf16.mxu1 %v3920_v52 }
 0xadd   : > { %2204 = vmatpush1.bf16.msra.mxu0 %v3925_v63  ;;  %2245 = vmatpush1.bf16.msra.mxu1 %v3931_v60 }
 0xae0   : > { %2222 = vmatmul.mubr.bf16.vlgmr.msra.gmra.mrb[28].mxu0 %v2176_v31  ;;  %2263 = vmatmul.mubr.bf16.vlgmr.msra.gmra.mrb[28].mxu1 %v2176_v31 }
 0xbb3   : > { %v2223_v49 = vpop.f32.mrb[28].mxu0  ;;  %v2264_v44 = vpop.f32.mrb[28].mxu1 }
 0xbb4   : > { %v2271_v56 = vadd.f32 %v2223_v49, %v2185_v3  ;;  %v2225_v4 = vpop.f32.mrb[29].mxu0  ;;  %v2266_v32 = vpop.f32.mrb[29].mxu1  ;;  %v2273_v40 = vadd.f32 %v2264_v44, %v2187_v8 }
 0xbb5   : > { %v2272_v34 = vadd.f32 %v2225_v4, %v2186_v46  ;;  %v2227_v33 = vpop.f32.mrb[30].mxu0  ;;  %v2268_v35 = vpop.f32.mrb[30].mxu1  ;;  %v2274_v12 = vadd.f32 %v2266_v32, %v2188_v41 }
 0xbb6   : > { %v2675_v36 = vmul.f32 -1.442695, %v2271_v56  ;;  %v2228_v38 = vpop.f32.mrb[31].mxu0  ;;  %v2269_v39 = vpop.f32.mrb[31].mxu1  ;;  %v2677_v43 = vmul.f32 -1.442695, %v2273_v40 }
 0xbb7   : > { %v2676_v6 = vmul.f32 -1.442695, %v2272_v34 }
 0xbb8   : > { %2925 = vpow2.f32 %v2675_v36 }
 0xbb9   : > { %2927 = vpow2.f32 %v2676_v6 }
 0xbba   : > { %2929 = vpow2.f32 %v2677_v43 }
 0xbbb   : > { %2931 = vtanh.f32 %v2274_v12 }
 0xbc2   : > { %v2926_v13 = vpop.eup %2925 }
 0xbc3   : > { %v2928_v16 = vpop.eup %2927  ;;  %v2284_v17 = vadd.f32 1.0, %v2926_v13 }
 0xbc4   : > { %v2285_v20 = vadd.f32 1.0, %v2928_v16  ;;  %v2930_v21 = vpop.eup %2929 }
 0xbc5   : > { %2933 = vrcp.f32 %v2284_v17  ;;  %v2932_v24 = vpop.eup %2931  ;;  %v2286_v28 = vadd.f32 1.0, %v2930_v21 }
 0xbc6   : > { %2935 = vrcp.f32 %v2285_v20 }
 0xbc7   : > { %2937 = vrcp.f32 %v2286_v28 }
 0xbcf   : > { %v2934_v25 = vpop.eup %2933 }
 0xbd0   : > { %v2936_v29 = vpop.eup %2935  ;;  %v2295_v57 = vmul.f32 %v2934_v25, %v2932_v24 }
 0xbd1   : > { %v2294_v47 = vmul.f32 %v2936_v29, %v4184_v48  ;;  %v2938_v63 = vpop.eup %2937 }
 0xbd3   : > { %v2296_v52 = vadd.f32 %v2295_v57, %v2294_v47 }
 0xbd5   : > { %2939 = vtanh.f32 %v2296_v52 }
 0xbdc   : > { %2302 = sbr.rel (%p3943_p10) target bundleno = 3045 (0xbe5), region = 100 }
 0xbdf   : > { %v2940_v60 = vpop.eup %2939 }
 0xbe0   : > { %v2298_v51 = vmul.f32 %v2940_v60, %v2938_v63 }
 0xbe2   : > { %v2299_v58 = vpack.c.bf16 %v2298_v51, %v2298_v51 }
 0xbe4   : > { %2306 = vst [vmem:[#allocation2 + $0x1c] sm:$0xf] %v2299_v58 }
 0xbe5 PF: > { %p2679_p11 = scmp.ne.s32.totalorder %s3117_s21, 1 }
 0xbe6   : > { %v2941_v61 = vld [vmem:[#allocation10] sm:$0xff] (!%p2679_p11)   ;;  %v3138_v45 = vmov (!%p2679_p11), 0.0   ;;  %v2942_v59 = vld [vmem:[#allocation10 + $0x8] sm:$0xff] (!%p2679_p11)   ;;  %vm3139_vm0 = vmmov (!%p2679_p11), 0   ;;  %v2943_v54 = vld [vmem:[#allocation10 + $0x10] sm:$0xff] (!%p2679_p11)  }
 0xbe7   : > { %2310 = sbr.rel (%p2679_p11) target bundleno = 3294 (0xcde), region = 104  ;;  %2704 = vmatprep.subr.bf16.mxu0 (!%p2679_p11), %v3138_v45  ;;  %2720 = vmatprep.mubr.msk.bf16.mxu0 (!%p2679_p11), %vm3139_vm0, %v3138_v45  ;;  %v2944_v55 = vld [vmem:[#allocation10 + $0x18] sm:$0xff] (!%p2679_p11)   ;;  %v2945_v53 = vld [vmem:[#allocation10 + $0x20] sm:$0xff] (!%p2679_p11)   ;;  %v2946_v62 = vld [vmem:[#allocation10 + $0x28] sm:$0xff] (!%p2679_p11)  }
 0xbe8   : > { %2705 = vmatpush3.bf16.msra.mxu0 (!%p2679_p11), %v2941_v61  ;;  %v2947_v0 = vld [vmem:[#allocation10 + $0x30] sm:$0xff] (!%p2679_p11)   ;;  %v2948_v1 = vld [vmem:[#allocation10 + $0x38] sm:$0xff] (!%p2679_p11)   ;;  %v2680_v2 = vld [vmem:[%s4272_s5] ss:$0 sm:$0xff] (!%p2679_p11) }
 0xbe9   : > { %2706 = vmatprep.subr.bf16.mxu0 (!%p2679_p11), %v3138_v45 }
 0xbec   : > { %2707 = vmatpush3.bf16.msra.mxu0 (!%p2679_p11), %v2942_v59 }
 0xbed   : > { %2708 = vmatprep.subr.bf16.mxu0 (!%p2679_p11), %v3138_v45 }
 0xbf0   : > { %2709 = vmatpush3.bf16.msra.mxu0 %v2943_v54 }
 0xbf1   : > { %2710 = vmatprep.subr.bf16.mxu0 %v3138_v45 }
 0xbf4   : > { %2711 = vmatpush3.bf16.msra.mxu0 %v2944_v55 }
 0xbf5   : > { %2712 = vmatprep.subr.bf16.mxu0 %v3138_v45 }
 0xbf8   : > { %2713 = vmatpush3.bf16.msra.mxu0 %v2945_v53 }
 0xbf9   : > { %2714 = vmatprep.subr.bf16.mxu0 %v3138_v45 }
 0xbfc   : > { %2715 = vmatpush3.bf16.msra.mxu0 %v2946_v62 }
 0xbfd   : > { %2716 = vmatprep.subr.bf16.mxu0 %v3138_v45 }
 0xc00   : > { %2717 = vmatpush3.bf16.msra.mxu0 %v2947_v0 }
 0xc01   : > { %2718 = vmatprep.subr.bf16.mxu0 %v3138_v45 }
 0xc04   : > { %2719 = vmatpush3.bf16.msra.mxu0 %v2948_v1 }
 0xc07   : > { %2721 = vmatmul.mubr.bf16.vlgmr.msra.gmra.mrb[0].mxu0 %v2299_v58 }
 0xcda   : > { %v2416_v5 = vpop.f32.mrb[0].mxu0 }
 0xcdb   : > { %v2417_v37 = vadd.f32 %v2680_v2, %v2416_v5  ;;  %v2722_v7 = vpop.f32.mrb[1].mxu0 }
 0xcdc   : > { %v2419_v50 = vpop.f32.mrb[2].mxu0 }
 0xcdd   : > { %2422 = vst [vmem:[#allocation12] sm:$0xff] %v2417_v37  ;;  %v2723_v42 = vpop.f32.mrb[3].mxu0 }
 0xcde PF: > { %s4350_s8 = sadd.s32 4294967295, %s3125_s23   ;;  %s3140_s12 = smov [#allocation12]  }
 0xcdf   : > { %p4232_p12 = scmp.eq.s32.totalorder %s4350_s8, 1  ;;  %s2432_s14 = sshll.u32 %s3140_s12, 4  ;;  %s2433_s14 = int_to_ptr.vmem [resolvable:$true] %s2432_s14 }
 0xce0   : > { %s3061_s16 = scalar_lea.vmem %s2433_s14, 128  ;;  %p3068_p1 = scmp.lt.s32.totalorder %s2433_s14, %s2433_s14 }
 0xce1   : > { %p3062_p13 = scmp.ne.s32.totalorder %s2433_s14, %s3061_s16  ;;  %p3069_p4 = scmp.lt.s32.totalorder %s3061_s16, %s3061_s16 }
 0xce3   : > { %p3063_p6 = pnand %p3062_p13, %p4232_p12  ;;  %p3070_p7 = por %p3069_p4, %p3068_p1 }
 0xce5   : > { %p3064_p0 = pneg %p3063_p6 }
 0xce7   : > { %p3071_p9 = pnand %p3070_p7, %p3064_p0 }
 0xce9   : > { %3074 = shalt.err (!%p3071_p9)
}
 0xcea   : > { %s3075_s9 = scalar_lea.hbm %s4273_s6, 128 }
 0xceb   : > { %p3076_p3 = scmp.ne.s32.totalorder %s4273_s6, %s3075_s9  ;;  %p3081_p2 = scmp.lt.u32.totalorder %s3075_s9, %s4273_s6 }
 0xced   : > { %p3077_p8 = pnand %p3076_p3, %p4232_p12 }
 0xcef   : > { %p3078_p5 = pneg %p3077_p8 }
 0xcf1   : > { %p3083_p10 = pnand %p3081_p2, %p3078_p5 }
 0xcf3   : > { %3086 = shalt.err (!%p3083_p10)
}
 0xcf4   : > { %2741 = dma.vmem_to_hbm [thread:$0]  (%p4232_p12), %s2433_s14, 128, %s4273_s6, [#allocation6]  }
 0xcf5   : > { %3112 = dma.done.wait (%p4232_p12), [#allocation6], 128  }
 0xcf6   : > { %3114 = vsyncadd (%p4232_p12), [#allocation6], 4294967168 }
 0xcf7 PF: > { %s20_s23 = sadd.s32 1, %s3125_s23   ;;  %s4352_s21 = smov %s3121_s22 }
 0xcf8   : > { %p17_p11 = scmp.ge.s32.totalorder %s20_s23, 4   ;;  %s4353_s22 = smov %s4355_s30 }
 0xcfa   :  { %19 = sbr.rel (!%p17_p11) target bundleno = 5 (0x5), region = 148 }
 0xd01   :  { %2445 = vsyncpa [#allocation5], 1 }
 0xd02   :  { %2447 = vsyncpa [#allocation5 + $0x1], 1 }
 0xd03   :  { %2448 = vsyncpa [#allocation8], 1 }
 0xd04   :  { %2449 = vsyncpa [#allocation11], 1 }
 0xd05   :  { %2450 = vsyncpa [#allocation6], 1 }
 0xd06   :  { %2452 = vsyncpa [#allocation6 + $0x1], 1 }

</bundles_post_ra>
